<compile_context>
chip_gen: v7x
topology: tpu7x:2x2x1
jax: 0.10.0
libtpu: 0.0.40
codegen_flags: <defaults>
</compile_context>

<pallas_src>
import functools

import jax
import jax.numpy as jnp
from jax.experimental import pallas as pl
from jax.experimental.pallas import tpu as pltpu


_VMEM_LIMIT = 32 * 1024 * 1024     # safe on v5e/v6e (128 MiB phys) and v7x (64 MiB)
_MXU_DTYPE = jnp.bfloat16          # MXU operands; accumulation stays f32
_LN_EPS = 1e-6


def _tile(dim, target, align):
    """Largest multiple of `align` that divides `dim` and is <= target; else full dim."""
    if dim <= target:
        return dim
    t = (target // align) * align
    while t >= align:
        if dim % t == 0:
            return t
        t -= align
    return dim


# --------------------------- tiled matmul kernels ----------------------------

def _matmul_bias_kernel(x_ref, w_ref, b_ref, o_ref, acc_ref):
    @pl.when(pl.program_id(2) == 0)
    def _():
        acc_ref[...] = jnp.zeros_like(acc_ref)

    acc_ref[...] += jnp.dot(x_ref[...].astype(_MXU_DTYPE),
                            w_ref[...].astype(_MXU_DTYPE),
                            preferred_element_type=jnp.float32)

    @pl.when(pl.program_id(2) == pl.num_programs(2) - 1)
    def _():
        o_ref[...] = acc_ref[...] + b_ref[...]


def _matmul_nobias_kernel(x_ref, w_ref, o_ref, acc_ref):
    @pl.when(pl.program_id(2) == 0)
    def _():
        acc_ref[...] = jnp.zeros_like(acc_ref)

    acc_ref[...] += jnp.dot(x_ref[...].astype(_MXU_DTYPE),
                            w_ref[...].astype(_MXU_DTYPE),
                            preferred_element_type=jnp.float32)

    @pl.when(pl.program_id(2) == pl.num_programs(2) - 1)
    def _():
        o_ref[...] = acc_ref[...]


def matmul(x2d, w_t, b=None):
    """x2d: (M, K) f32; w_t: (K, N) pre-transposed weight; b: (N,) or None."""
    M, K = x2d.shape
    N = w_t.shape[1]
    tm = _tile(M, 256, 8)
    tn = _tile(N, 256, 128)
    tk = _tile(K, 512, 128)
    grid = (M // tm, N // tn, K // tk)
    cp = pltpu.CompilerParams(
        dimension_semantics=("parallel", "parallel", "arbitrary"),
        vmem_limit_bytes=_VMEM_LIMIT)
    x_spec = pl.BlockSpec((tm, tk), lambda i, j, k: (i, k))
    w_spec = pl.BlockSpec((tk, tn), lambda i, j, k: (k, j))
    o_spec = pl.BlockSpec((tm, tn), lambda i, j, k: (i, j))
    scratch = [pltpu.VMEM((tm, tn), jnp.float32)]
    if b is None:
        return pl.pallas_call(
            _matmul_nobias_kernel,
            out_shape=jax.ShapeDtypeStruct((M, N), jnp.float32),
            grid=grid,
            in_specs=[x_spec, w_spec],
            out_specs=o_spec,
            scratch_shapes=scratch,
            compiler_params=cp,
        )(x2d.astype(jnp.float32), w_t.astype(jnp.float32))
    return pl.pallas_call(
        _matmul_bias_kernel,
        out_shape=jax.ShapeDtypeStruct((M, N), jnp.float32),
        grid=grid,
        in_specs=[x_spec, w_spec,
                  pl.BlockSpec((1, tn), lambda i, j, k: (0, j))],
        out_specs=o_spec,
        scratch_shapes=scratch,
        compiler_params=cp,
    )(x2d.astype(jnp.float32), w_t.astype(jnp.float32),
      jnp.asarray(b, jnp.float32).reshape(1, N))


# ------------------- fused proj + residual + LayerNorm -----------------------

def _proj_res_ln_kernel(x_ref, w_ref, b_ref, r_ref, g_ref, bt_ref, o_ref,
                        acc_ref, *, eps):
    k = pl.program_id(1)

    @pl.when(k == 0)
    def _():
        acc_ref[...] = jnp.zeros_like(acc_ref)

    acc_ref[...] += jnp.dot(x_ref[...].astype(_MXU_DTYPE),
                            w_ref[...].astype(_MXU_DTYPE),
                            preferred_element_type=jnp.float32)

    @pl.when(k == pl.num_programs(1) - 1)
    def _():
        y = acc_ref[...] + b_ref[...] + r_ref[...]
        mu = jnp.mean(y, axis=-1, keepdims=True)
        yc = y - mu
        var = jnp.mean(yc * yc, axis=-1, keepdims=True)
        o_ref[...] = yc * jax.lax.rsqrt(var + eps) * g_ref[...] + bt_ref[...]


def proj_residual_layer_norm(x2d, r2d, w_t, b, gamma, beta, eps=_LN_EPS):
    """LayerNorm(x2d @ w_t + b + r2d) over the last axis; one fused kernel."""
    M, K = x2d.shape
    C = w_t.shape[1]
    tm = _tile(M, 256, 8)
    tk = _tile(K, 512, 128)
    kernel = functools.partial(_proj_res_ln_kernel, eps=eps)
    return pl.pallas_call(
        kernel,
        out_shape=jax.ShapeDtypeStruct((M, C), jnp.float32),
        grid=(M // tm, K // tk),
        in_specs=[
            pl.BlockSpec((tm, tk), lambda i, k: (i, k)),
            pl.BlockSpec((tk, C), lambda i, k: (k, 0)),
            pl.BlockSpec((1, C), lambda i, k: (0, 0)),
            pl.BlockSpec((tm, C), lambda i, k: (i, 0)),
            pl.BlockSpec((1, C), lambda i, k: (0, 0)),
            pl.BlockSpec((1, C), lambda i, k: (0, 0)),
        ],
        out_specs=pl.BlockSpec((tm, C), lambda i, k: (i, 0)),
        scratch_shapes=[pltpu.VMEM((tm, C), jnp.float32)],
        compiler_params=pltpu.CompilerParams(
            dimension_semantics=("parallel", "arbitrary"),
            vmem_limit_bytes=_VMEM_LIMIT),
    )(x2d.astype(jnp.float32), w_t.astype(jnp.float32),
      jnp.asarray(b, jnp.float32).reshape(1, C),
      r2d.astype(jnp.float32),
      gamma.reshape(1, C).astype(jnp.float32),
      beta.reshape(1, C).astype(jnp.float32))


# --------------------------- fused add + LayerNorm ---------------------------

def _add_ln_kernel(x_ref, r_ref, g_ref, b_ref, o_ref, *, eps):
    y = x_ref[...] + r_ref[...]
    mu = jnp.mean(y, axis=-1, keepdims=True)
    yc = y - mu
    var = jnp.mean(yc * yc, axis=-1, keepdims=True)
    o_ref[...] = yc * jax.lax.rsqrt(var + eps) * g_ref[...] + b_ref[...]


def add_layer_norm(x2d, r2d, gamma, beta, eps=_LN_EPS):
    M, C = x2d.shape
    tm = _tile(M, 512, 8)
    kernel = functools.partial(_add_ln_kernel, eps=eps)
    return pl.pallas_call(
        kernel,
        out_shape=jax.ShapeDtypeStruct((M, C), jnp.float32),
        grid=(M // tm,),
        in_specs=[
            pl.BlockSpec((tm, C), lambda i: (i, 0)),
            pl.BlockSpec((tm, C), lambda i: (i, 0)),
            pl.BlockSpec((1, C), lambda i: (0, 0)),
            pl.BlockSpec((1, C), lambda i: (0, 0)),
        ],
        out_specs=pl.BlockSpec((tm, C), lambda i: (i, 0)),
        compiler_params=pltpu.CompilerParams(
            dimension_semantics=("parallel",),
            vmem_limit_bytes=_VMEM_LIMIT),
    )(x2d.astype(jnp.float32), r2d.astype(jnp.float32),
      gamma.reshape(1, C).astype(jnp.float32),
      beta.reshape(1, C).astype(jnp.float32))


# ----------------------------- attention kernel ------------------------------

def _attn_kernel(q_ref, k_ref, v_ref, m_ref, o_ref, *, num_heads, scale_mul):
    # q: (1,T,C), k/v: (1,S,C), m: (1,T,S) additive mask -> o: (1,T,C)
    q = q_ref[0]
    k = k_ref[0]
    v = v_ref[0]
    m = m_ref[0]
    T, C = q.shape
    d = C // num_heads
    dn = (((1,), (1,)), ((), ()))      # contract last dims: q_h (T,d) . k_h (S,d) -> (T,S)
    outs = []
    # TODO(synk): for long sequences convert to an online-softmax (flash) form
    # tiled over S instead of materializing the full (T, S) score matrix.
    for h in range(num_heads):
        lo = h * d
        qh = q[:, lo:lo + d]
        kh = k[:, lo:lo + d]
        vh = v[:, lo:lo + d]
        s = jax.lax.dot_general(qh.astype(_MXU_DTYPE), kh.astype(_MXU_DTYPE), dn,
                                preferred_element_type=jnp.float32)
        s = s * scale_mul + m                       # additive mask (0 / -1e30)
        s = s - jnp.max(s, axis=-1, keepdims=True)
        p = jnp.exp(s)
        p = p * pl.reciprocal(jnp.sum(p, axis=-1, keepdims=True), approx=True)
        outs.append(jnp.dot(p.astype(_MXU_DTYPE), vh.astype(_MXU_DTYPE),
                            preferred_element_type=jnp.float32))
    o_ref[0] = jnp.concatenate(outs, axis=-1)       # single lane-dense (T, C) store


def mha_core(q, k, v, mask_add, num_heads, scale_mul):
    B, T, C = q.shape
    S = k.shape[1]
    kernel = functools.partial(_attn_kernel, num_heads=num_heads,
                               scale_mul=scale_mul)
    return pl.pallas_call(
        kernel,
        out_shape=jax.ShapeDtypeStruct((B, T, C), jnp.float32),
        grid=(B,),
        in_specs=[
            pl.BlockSpec((1, T, C), lambda b: (b, 0, 0)),
            pl.BlockSpec((1, S, C), lambda b: (b, 0, 0)),
            pl.BlockSpec((1, S, C), lambda b: (b, 0, 0)),
            pl.BlockSpec((1, T, S), lambda b: (b, 0, 0)),
        ],
        out_specs=pl.BlockSpec((1, T, C), lambda b: (b, 0, 0)),
        compiler_params=pltpu.CompilerParams(
            dimension_semantics=("parallel",),
            vmem_limit_bytes=_VMEM_LIMIT),
    )(q.astype(jnp.float32), k.astype(jnp.float32), v.astype(jnp.float32),
      mask_add.astype(jnp.float32))


# --------------------------- Model (glue in JAX) -----------------------------

def self_attention_block(p, x, mask_add, num_heads, embed_dim):
    B, T, C = x.shape
    M = B * T
    x2 = x.reshape(M, C)
    # fused Q/K/V projection: one matmul against the stacked (C, 3C) weight (no bias)
    qkv = matmul(x2, p["w_qkv_t"])
    q2, k2, v2 = qkv[:, :C], qkv[:, C:2 * C], qkv[:, 2 * C:]
    scale_mul = float(embed_dim) ** 0.5   # reference: scores / embed_dim**-0.5
    attn = mha_core(q2.reshape(B, T, C), k2.reshape(B, T, C),
                    v2.reshape(B, T, C), mask_add, num_heads, scale_mul)
    # fused c_proj + residual (post-q-projection, as in reference) + LayerNorm
    out = proj_residual_layer_norm(attn.reshape(M, C), q2,
                                   p["c_proj_w_t"], p["c_proj_b"],
                                   p["ln_g"], p["ln_b"])
    return out.reshape(B, T, C)


def cross_attention_block(p, x, memo, mask_add, num_heads, embed_dim):
    B, T, C = x.shape
    S = memo.shape[1]
    M = B * T
    q2 = matmul(x.reshape(M, C), p["w_q_t"])                       # no bias
    kv = matmul(memo.reshape(B * S, C), p["w_kv_t"])               # fused K/V, no bias
    k = kv[:, :C].reshape(B, S, C)
    v = kv[:, C:].reshape(B, S, C)
    scale_mul = float(embed_dim) ** 0.5
    attn = mha_core(q2.reshape(B, T, C), k, v, mask_add, num_heads, scale_mul)
    out = proj_residual_layer_norm(attn.reshape(M, C), q2,
                                   p["c_proj_w_t"], p["c_proj_b"],
                                   p["ln_g"], p["ln_b"])
    return out.reshape(B, T, C)


def decoder_forward(params, tar_seq, memo, tar_mask, *, num_heads, embed_dim):
    B, T = tar_seq.shape
    C = embed_dim
    M = B * T
    # word embedding lookup (gather) — glue in plain JAX (XLA gather)
    x = jnp.take(params["word_embed"], tar_seq, axis=0)            # (B, T, C)
    pe = jnp.broadcast_to(params["pe_table"][:T][None], (B, T, C))
    # additive attention mask, built once and reused by all layers / both attns
    mask_add = jnp.where(tar_mask == 0, jnp.float32(-1e30), jnp.float32(0.0))
    # fused: (embedding + PE) add + initial LayerNorm  (dropout = identity)
    x = add_layer_norm(x.reshape(M, C), pe.reshape(M, C),
                       params["ln_g"], params["ln_b"]).reshape(B, T, C)
    for lp in params["layers"]:
        y = self_attention_block(lp["self_attn"], x, mask_add, num_heads, C)
        y = cross_attention_block(lp["cross_attn"], y, memo, mask_add,
                                  num_heads, C)
        x = matmul(y.reshape(M, C), lp["fc_w_t"], lp["fc_b"]).reshape(B, T, C)
        # NOTE: DecoderLayer.ff (FeedForward) is never invoked in the reference forward.
    return x


# ------------------------------ Param building -------------------------------

def _sinusoidal_pe_table(embed_dim, theta, n_position):
    # Reproduces the reference bug: the nested helper receives (pos, embed_dim)
    # bound to (self, pos), so the table value is embed_dim / theta**(2*(i//2)/C)
    # and is identical for every position.
    i = jnp.arange(embed_dim)
    exponent = (2.0 * (i // 2).astype(jnp.float32)) / float(embed_dim)
    raw = float(embed_dim) / jnp.power(float(theta), exponent)
    row = jnp.where(i % 2 == 0, jnp.sin(raw), jnp.cos(raw)).astype(jnp.float32)
    return jnp.broadcast_to(row, (n_position, embed_dim))


def _init_linear_t(key, in_dim, out_dim, scale=0.02, bias=True):
    # weights stored PRE-TRANSPOSED as (in_dim, out_dim) so kernels need no w.T
    kw, kb = jax.random.split(key)
    w_t = scale * jax.random.normal(kw, (in_dim, out_dim), jnp.float32)
    if bias:
        b = scale * jax.random.normal(kb, (out_dim,), jnp.float32)
    else:
        b = jnp.zeros((out_dim,), jnp.float32)
    return w_t, b


def _init_mha(key, embed_dim, cross):
    ks = jax.random.split(key, 4)
    wq_t, _ = _init_linear_t(ks[0], embed_dim, embed_dim, bias=False)
    wk_t, _ = _init_linear_t(ks[1], embed_dim, embed_dim, bias=False)
    wv_t, _ = _init_linear_t(ks[2], embed_dim, embed_dim, bias=False)
    wc_t, bc = _init_linear_t(ks[3], embed_dim, embed_dim, bias=True)
    p = {
        "c_proj_w_t": wc_t, "c_proj_b": bc,
        "ln_g": jnp.ones((embed_dim,), jnp.float32),
        "ln_b": jnp.zeros((embed_dim,), jnp.float32),
    }
    if cross:
        p["w_q_t"] = wq_t
        p["w_kv_t"] = jnp.concatenate([wk_t, wv_t], axis=1)        # (C, 2C)
    else:
        p["w_qkv_t"] = jnp.concatenate([wq_t, wk_t, wv_t], axis=1)  # (C, 3C)
    return p


def init_decoder_params(key, *, depth, embed_dim, num_words, max_length,
                        padding_idx=0):
    keys = jax.random.split(key, depth + 1)
    emb = 0.02 * jax.random.normal(keys[0], (num_words, embed_dim), jnp.float32)
    emb = emb.at[padding_idx].set(0.0)    # padding_idx row is zero
    layers = []
    for li in range(depth):
        lk = jax.random.split(keys[li + 1], 3)
        fc_w_t, fc_b = _init_linear_t(lk[2], embed_dim, embed_dim, bias=True)
        layers.append({
            "self_attn": _init_mha(lk[0], embed_dim, cross=False),
            "cross_attn": _init_mha(lk[1], embed_dim, cross=True),
            "fc_w_t": fc_w_t, "fc_b": fc_b,
        })
    return {
        "word_embed": emb,
        "pe_table": _sinusoidal_pe_table(embed_dim, 10000, max_length),
        "ln_g": jnp.ones((embed_dim,), jnp.float32),
        "ln_b": jnp.zeros((embed_dim,), jnp.float32),
        "layers": layers,
    }


# ----------------------------------- main ------------------------------------

if __name__ == "__main__":
    B, T = 2, 16
    embed_dim, num_heads, depth = 32, 4, 2
    num_words, max_length = 100, 64

    key = jax.random.PRNGKey(0)
    kp, ks, km = jax.random.split(key, 3)

    params = init_decoder_params(kp, depth=depth, embed_dim=embed_dim,
                                 num_words=num_words, max_length=max_length)

    tar_seq = jax.random.randint(ks, (B, T), 1, num_words, dtype=jnp.int32)
    memo = jax.random.normal(km, (B, T, embed_dim), jnp.float32)
    # causal self-attention mask (B, T, T); also used for cross-attn in reference
    tar_mask = jnp.broadcast_to(
        jnp.tril(jnp.ones((T, T), jnp.int32)), (B, T, T))

    fwd = jax.jit(functools.partial(decoder_forward,
                                    num_heads=num_heads, embed_dim=embed_dim))
    out = fwd(params, tar_seq, memo, tar_mask)
    out = jax.block_until_ready(out)
    assert out.shape == (B, T, embed_dim)
    assert bool(jnp.all(jnp.isfinite(out)))
    print("KERNEL_OK")
</pallas_src>

<mosaic_0001>
module attributes {stable_mosaic.version = 11 : i64} {
  func.func @_add_ln_kernel(%arg0: i32, %arg1: memref<32x32xf32, #tpu.memory_space<vmem>>, %arg2: memref<32x32xf32, #tpu.memory_space<vmem>>, %arg3: memref<1x32xf32, #tpu.memory_space<vmem>>, %arg4: memref<1x32xf32, #tpu.memory_space<vmem>>, %arg5: memref<32x32xf32, #tpu.memory_space<vmem>>) attributes {dimension_semantics = [#tpu.dimension_semantics<parallel>], iteration_bounds = array<i64: 1>, scalar_prefetch = 0 : i64, scratch_operands = 0 : i64, tpu.core_type = #tpu.core_type<tc>, window_params = [{transform_indices = @transform_0, window_bounds = array<i64: 32, 32>}, {transform_indices = @transform_1, window_bounds = array<i64: 32, 32>}, {pipeline_mode = #tpu.pipeline_mode<synchronous>, transform_indices = @transform_2, window_bounds = array<i64: 1, 32>}, {pipeline_mode = #tpu.pipeline_mode<synchronous>, transform_indices = @transform_3, window_bounds = array<i64: 1, 32>}, {transform_indices = @transform_4, window_bounds = array<i64: 32, 32>}]} {
    %c0 = arith.constant 0 : index
    %c0_0 = arith.constant 0 : index
    %0 = vector.load %arg1[%c0, %c0_0] : memref<32x32xf32, #tpu.memory_space<vmem>>, vector<32x32xf32>
    %c0_1 = arith.constant 0 : index
    %c0_2 = arith.constant 0 : index
    %1 = vector.load %arg2[%c0_1, %c0_2] : memref<32x32xf32, #tpu.memory_space<vmem>>, vector<32x32xf32>
    %2 = arith.addf %0, %1 : vector<32x32xf32>
    %cst = arith.constant dense<0.000000e+00> : vector<32xf32>
    %3 = vector.multi_reduction <add>, %2, %cst [1] : vector<32x32xf32> to vector<32xf32>
    %4 = vector.shape_cast %3 : vector<32xf32> to vector<32x1xf32>
    %cst_3 = arith.constant 3.200000e+01 : f32
    %5 = vector.broadcast %cst_3 : f32 to vector<32x1xf32>
    %6 = arith.divf %4, %5 : vector<32x1xf32>
    %7 = vector.broadcast %6 : vector<32x1xf32> to vector<32x32xf32>
    %8 = arith.subf %2, %7 : vector<32x32xf32>
    %9 = arith.mulf %8, %8 : vector<32x32xf32>
    %cst_4 = arith.constant dense<0.000000e+00> : vector<32xf32>
    %10 = vector.multi_reduction <add>, %9, %cst_4 [1] : vector<32x32xf32> to vector<32xf32>
    %11 = vector.shape_cast %10 : vector<32xf32> to vector<32x1xf32>
    %cst_5 = arith.constant 3.200000e+01 : f32
    %12 = vector.broadcast %cst_5 : f32 to vector<32x1xf32>
    %13 = arith.divf %11, %12 : vector<32x1xf32>
    %cst_6 = arith.constant 9.99999997E-7 : f32
    %14 = vector.broadcast %cst_6 : f32 to vector<32x1xf32>
    %15 = arith.addf %13, %14 : vector<32x1xf32>
    %16 = math.rsqrt %15 : vector<32x1xf32>
    %17 = vector.broadcast %16 : vector<32x1xf32> to vector<32x32xf32>
    %18 = arith.mulf %8, %17 : vector<32x32xf32>
    %c0_7 = arith.constant 0 : index
    %c0_8 = arith.constant 0 : index
    %19 = vector.load %arg3[%c0_7, %c0_8] : memref<1x32xf32, #tpu.memory_space<vmem>>, vector<1x32xf32>
    %20 = vector.broadcast %19 : vector<1x32xf32> to vector<32x32xf32>
    %21 = arith.mulf %18, %20 : vector<32x32xf32>
    %c0_9 = arith.constant 0 : index
    %c0_10 = arith.constant 0 : index
    %22 = vector.load %arg4[%c0_9, %c0_10] : memref<1x32xf32, #tpu.memory_space<vmem>>, vector<1x32xf32>
    %23 = vector.broadcast %22 : vector<1x32xf32> to vector<32x32xf32>
    %24 = arith.addf %21, %23 : vector<32x32xf32>
    %c0_11 = arith.constant 0 : index
    %c0_12 = arith.constant 0 : index
    %25 = vector.load %arg5[%c0_11, %c0_12] : memref<32x32xf32, #tpu.memory_space<vmem>>, vector<32x32xf32>
    tpu.vector_store %arg5[%c0_11, %c0_12], %24 {strides = array<i32>} : memref<32x32xf32, #tpu.memory_space<vmem>>, vector<32x32xf32>,
    return
  }
  func.func @transform_0(%arg0: i32) -> (i32, i32) {
    %c0_i32 = arith.constant 0 : i32
    %c0_i32_0 = arith.constant 0 : i32
    return %arg0, %c0_i32 : i32, i32
  }
  func.func @transform_1(%arg0: i32) -> (i32, i32) {
    %c0_i32 = arith.constant 0 : i32
    %c0_i32_0 = arith.constant 0 : i32
    return %arg0, %c0_i32 : i32, i32
  }
  func.func @transform_2(%arg0: i32) -> (i32, i32) {
    %c0_i32 = arith.constant 0 : i32
    %c0_i32_0 = arith.constant 0 : i32
    %c0_i32_1 = arith.constant 0 : i32
    return %c0_i32, %c0_i32_0 : i32, i32
  }
  func.func @transform_3(%arg0: i32) -> (i32, i32) {
    %c0_i32 = arith.constant 0 : i32
    %c0_i32_0 = arith.constant 0 : i32
    %c0_i32_1 = arith.constant 0 : i32
    return %c0_i32, %c0_i32_0 : i32, i32
  }
  func.func @transform_4(%arg0: i32) -> (i32, i32) {
    %c0_i32 = arith.constant 0 : i32
    %c0_i32_0 = arith.constant 0 : i32
    return %arg0, %c0_i32 : i32, i32
  }
}

module attributes {stable_mosaic.version = 11 : i64} {
  func.func @_matmul_nobias_kernel(%arg0: i32, %arg1: i32, %arg2: i32, %arg3: memref<32x32xf32, #tpu.memory_space<vmem>>, %arg4: memref<32x96xf32, #tpu.memory_space<vmem>>, %arg5: memref<32x96xf32, #tpu.memory_space<vmem>>, %arg6: memref<32x96xf32, #tpu.memory_space<vmem>>) attributes {dimension_semantics = [#tpu.dimension_semantics<parallel>, #tpu.dimension_semantics<parallel>, #tpu.dimension_semantics<arbitrary>], iteration_bounds = array<i64: 1, 1, 1>, scalar_prefetch = 0 : i64, scratch_operands = 1 : i64, tpu.core_type = #tpu.core_type<tc>, window_params = [{transform_indices = @transform_0, window_bounds = array<i64: 32, 32>}, {transform_indices = @transform_1, window_bounds = array<i64: 32, 96>}, {transform_indices = @transform_2, window_bounds = array<i64: 32, 96>}]} {
    %c0_i32 = arith.constant 0 : i32
    %0 = arith.cmpi eq, %arg2, %c0_i32 : i32
    %1 = arith.extui %0 : i1 to i32
    %c0_i32_0 = arith.constant 0 : i32
    %2 = arith.cmpi ne, %1, %c0_i32_0 : i32
    scf.if %2 {
      %cst_10 = arith.constant 0.000000e+00 : f32
      %14 = vector.broadcast %cst_10 : f32 to vector<32x96xf32>
      %c0_11 = arith.constant 0 : index
      %c0_12 = arith.constant 0 : index
      %15 = vector.load %arg6[%c0_11, %c0_12] : memref<32x96xf32, #tpu.memory_space<vmem>>, vector<32x96xf32>
      tpu.vector_store %arg6[%c0_11, %c0_12], %14 {strides = array<i32>} : memref<32x96xf32, #tpu.memory_space<vmem>>, vector<32x96xf32>,
    } else {
    }
    %c0 = arith.constant 0 : index
    %c0_1 = arith.constant 0 : index
    %3 = vector.load %arg6[%c0, %c0_1] : memref<32x96xf32, #tpu.memory_space<vmem>>, vector<32x96xf32>
    %c0_2 = arith.constant 0 : index
    %c0_3 = arith.constant 0 : index
    %4 = vector.load %arg3[%c0_2, %c0_3] : memref<32x32xf32, #tpu.memory_space<vmem>>, vector<32x32xf32>
    %5 = arith.truncf %4 : vector<32x32xf32> to vector<32x32xbf16>
    %c0_4 = arith.constant 0 : index
    %c0_5 = arith.constant 0 : index
    %6 = vector.load %arg4[%c0_4, %c0_5] : memref<32x96xf32, #tpu.memory_space<vmem>>, vector<32x96xf32>
    %7 = arith.truncf %6 : vector<32x96xf32> to vector<32x96xbf16>
    %cst = arith.constant dense<0.000000e+00> : vector<32x96xf32>
    %8 = tpu.matmul %5, %7, %cst {dimension_numbers = #tpu.dot_dimension_numbers<[1], [0], [0], [1], [0, 0, 1, 1], [], []>} : vector<32x32xbf16>, vector<32x96xbf16>, vector<32x96xf32> -> vector<32x96xf32>
    %9 = arith.addf %3, %8 : vector<32x96xf32>
    %c0_6 = arith.constant 0 : index
    %c0_7 = arith.constant 0 : index
    %10 = vector.load %arg6[%c0_6, %c0_7] : memref<32x96xf32, #tpu.memory_space<vmem>>, vector<32x96xf32>
    tpu.vector_store %arg6[%c0_6, %c0_7], %9 {strides = array<i32>} : memref<32x96xf32, #tpu.memory_space<vmem>>, vector<32x96xf32>,
    %c0_i32_8 = arith.constant 0 : i32
    %11 = arith.cmpi eq, %arg2, %c0_i32_8 : i32
    %12 = arith.extui %11 : i1 to i32
    %c0_i32_9 = arith.constant 0 : i32
    %13 = arith.cmpi ne, %12, %c0_i32_9 : i32
    scf.if %13 {
      %c0_10 = arith.constant 0 : index
      %c0_11 = arith.constant 0 : index
      %14 = vector.load %arg6[%c0_10, %c0_11] : memref<32x96xf32, #tpu.memory_space<vmem>>, vector<32x96xf32>
      %c0_12 = arith.constant 0 : index
      %c0_13 = arith.constant 0 : index
      %15 = vector.load %arg5[%c0_12, %c0_13] : memref<32x96xf32, #tpu.memory_space<vmem>>, vector<32x96xf32>
      tpu.vector_store %arg5[%c0_12, %c0_13], %14 {strides = array<i32>} : memref<32x96xf32, #tpu.memory_space<vmem>>, vector<32x96xf32>,
    } else {
    }
    return
  }
  func.func @transform_0(%arg0: i32, %arg1: i32, %arg2: i32) -> (i32, i32) {
    %c0_i32 = arith.constant 0 : i32
    return %arg0, %arg2 : i32, i32
  }
  func.func @transform_1(%arg0: i32, %arg1: i32, %arg2: i32) -> (i32, i32) {
    %c0_i32 = arith.constant 0 : i32
    return %arg2, %arg1 : i32, i32
  }
  func.func @transform_2(%arg0: i32, %arg1: i32, %arg2: i32) -> (i32, i32) {
    %c0_i32 = arith.constant 0 : i32
    return %arg0, %arg1 : i32, i32
  }
}

module attributes {stable_mosaic.version = 11 : i64} {
  func.func @_attn_kernel(%arg0: i32, %arg1: memref<1x16x32xf32, #tpu.memory_space<vmem>>, %arg2: memref<1x16x32xf32, #tpu.memory_space<vmem>>, %arg3: memref<1x16x32xf32, #tpu.memory_space<vmem>>, %arg4: memref<1x16x16xf32, #tpu.memory_space<vmem>>, %arg5: memref<1x16x32xf32, #tpu.memory_space<vmem>>) attributes {dimension_semantics = [#tpu.dimension_semantics<parallel>], iteration_bounds = array<i64: 2>, scalar_prefetch = 0 : i64, scratch_operands = 0 : i64, tpu.core_type = #tpu.core_type<tc>, window_params = [{transform_indices = @transform_0, window_bounds = array<i64: 1, 16, 32>}, {transform_indices = @transform_1, window_bounds = array<i64: 1, 16, 32>}, {transform_indices = @transform_2, window_bounds = array<i64: 1, 16, 32>}, {transform_indices = @transform_3, window_bounds = array<i64: 1, 16, 16>}, {transform_indices = @transform_4, window_bounds = array<i64: 1, 16, 32>}]} {
    %c0 = arith.constant 0 : index
    %c0_0 = arith.constant 0 : index
    %c0_1 = arith.constant 0 : index
    %0 = vector.load %arg1[%c0, %c0_0, %c0_1] : memref<1x16x32xf32, #tpu.memory_space<vmem>>, vector<1x16x32xf32>
    %1 = vector.shape_cast %0 : vector<1x16x32xf32> to vector<16x32xf32>
    %c0_2 = arith.constant 0 : index
    %c0_3 = arith.constant 0 : index
    %c0_4 = arith.constant 0 : index
    %2 = vector.load %arg2[%c0_2, %c0_3, %c0_4] : memref<1x16x32xf32, #tpu.memory_space<vmem>>, vector<1x16x32xf32>
    %3 = vector.shape_cast %2 : vector<1x16x32xf32> to vector<16x32xf32>
    %c0_5 = arith.constant 0 : index
    %c0_6 = arith.constant 0 : index
    %c0_7 = arith.constant 0 : index
    %4 = vector.load %arg3[%c0_5, %c0_6, %c0_7] : memref<1x16x32xf32, #tpu.memory_space<vmem>>, vector<1x16x32xf32>
    %5 = vector.shape_cast %4 : vector<1x16x32xf32> to vector<16x32xf32>
    %c0_8 = arith.constant 0 : index
    %c0_9 = arith.constant 0 : index
    %c0_10 = arith.constant 0 : index
    %6 = vector.load %arg4[%c0_8, %c0_9, %c0_10] : memref<1x16x16xf32, #tpu.memory_space<vmem>>, vector<1x16x16xf32>
    %7 = vector.shape_cast %6 : vector<1x16x16xf32> to vector<16x16xf32>
    %8 = vector.extract_strided_slice %1 {offsets = [0, 0], sizes = [16, 8], strides = [1, 1]} : vector<16x32xf32> to vector<16x8xf32>
    %9 = vector.extract_strided_slice %3 {offsets = [0, 0], sizes = [16, 8], strides = [1, 1]} : vector<16x32xf32> to vector<16x8xf32>
    %10 = vector.extract_strided_slice %5 {offsets = [0, 0], sizes = [16, 8], strides = [1, 1]} : vector<16x32xf32> to vector<16x8xf32>
    %11 = arith.truncf %8 : vector<16x8xf32> to vector<16x8xbf16>
    %12 = arith.truncf %9 : vector<16x8xf32> to vector<16x8xbf16>
    %cst = arith.constant dense<0.000000e+00> : vector<16x16xf32>
    %13 = tpu.matmul %11, %12, %cst {dimension_numbers = #tpu.dot_dimension_numbers<[1], [1], [0], [0], [0, 0, 1, 0], [], []>} : vector<16x8xbf16>, vector<16x8xbf16>, vector<16x16xf32> -> vector<16x16xf32>
    %cst_11 = arith.constant 5.65685415 : f32
    %14 = vector.broadcast %cst_11 : f32 to vector<16x16xf32>
    %15 = arith.mulf %13, %14 : vector<16x16xf32>
    %16 = arith.addf %15, %7 : vector<16x16xf32>
    %cst_12 = arith.constant dense<0xFF800000> : vector<16xf32>
    %17 = vector.multi_reduction <maximumf>, %16, %cst_12 [1] : vector<16x16xf32> to vector<16xf32>
    %18 = vector.shape_cast %17 : vector<16xf32> to vector<16x1xf32>
    %19 = vector.broadcast %18 : vector<16x1xf32> to vector<16x16xf32>
    %20 = arith.subf %16, %19 : vector<16x16xf32>
    %21 = math.exp %20 : vector<16x16xf32>
    %cst_13 = arith.constant dense<0.000000e+00> : vector<16xf32>
    %22 = vector.multi_reduction <add>, %21, %cst_13 [1] : vector<16x16xf32> to vector<16xf32>
    %23 = vector.shape_cast %22 : vector<16xf32> to vector<16x1xf32>
    %24 = tpu.reciprocal %23 {approx = true} : vector<16x1xf32> -> vector<16x1xf32>
    %25 = vector.broadcast %24 : vector<16x1xf32> to vector<16x16xf32>
    %26 = arith.mulf %21, %25 : vector<16x16xf32>
    %27 = arith.truncf %26 : vector<16x16xf32> to vector<16x16xbf16>
    %28 = arith.truncf %10 : vector<16x8xf32> to vector<16x8xbf16>
    %cst_14 = arith.constant dense<0.000000e+00> : vector<16x8xf32>
    %29 = tpu.matmul %27, %28, %cst_14 {dimension_numbers = #tpu.dot_dimension_numbers<[1], [0], [0], [1], [0, 0, 1, 1], [], []>} : vector<16x16xbf16>, vector<16x8xbf16>, vector<16x8xf32> -> vector<16x8xf32>
    %30 = vector.extract_strided_slice %1 {offsets = [0, 8], sizes = [16, 8], strides = [1, 1]} : vector<16x32xf32> to vector<16x8xf32>
    %31 = vector.extract_strided_slice %3 {offsets = [0, 8], sizes = [16, 8], strides = [1, 1]} : vector<16x32xf32> to vector<16x8xf32>
    %32 = vector.extract_strided_slice %5 {offsets = [0, 8], sizes = [16, 8], strides = [1, 1]} : vector<16x32xf32> to vector<16x8xf32>
    %33 = arith.truncf %30 : vector<16x8xf32> to vector<16x8xbf16>
    %34 = arith.truncf %31 : vector<16x8xf32> to vector<16x8xbf16>
    %cst_15 = arith.constant dense<0.000000e+00> : vector<16x16xf32>
    %35 = tpu.matmul %33, %34, %cst_15 {dimension_numbers = #tpu.dot_dimension_numbers<[1], [1], [0], [0], [0, 0, 1, 0], [], []>} : vector<16x8xbf16>, vector<16x8xbf16>, vector<16x16xf32> -> vector<16x16xf32>
    %cst_16 = arith.constant 5.65685415 : f32
    %36 = vector.broadcast %cst_16 : f32 to vector<16x16xf32>
    %37 = arith.mulf %35, %36 : vector<16x16xf32>
    %38 = arith.addf %37, %7 : vector<16x16xf32>
    %cst_17 = arith.constant dense<0xFF800000> : vector<16xf32>
    %39 = vector.multi_reduction <maximumf>, %38, %cst_17 [1] : vector<16x16xf32> to vector<16xf32>
    %40 = vector.shape_cast %39 : vector<16xf32> to vector<16x1xf32>
    %41 = vector.broadcast %40 : vector<16x1xf32> to vector<16x16xf32>
    %42 = arith.subf %38, %41 : vector<16x16xf32>
    %43 = math.exp %42 : vector<16x16xf32>
    %cst_18 = arith.constant dense<0.000000e+00> : vector<16xf32>
    %44 = vector.multi_reduction <add>, %43, %cst_18 [1] : vector<16x16xf32> to vector<16xf32>
    %45 = vector.shape_cast %44 : vector<16xf32> to vector<16x1xf32>
    %46 = tpu.reciprocal %45 {approx = true} : vector<16x1xf32> -> vector<16x1xf32>
    %47 = vector.broadcast %46 : vector<16x1xf32> to vector<16x16xf32>
    %48 = arith.mulf %43, %47 : vector<16x16xf32>
    %49 = arith.truncf %48 : vector<16x16xf32> to vector<16x16xbf16>
    %50 = arith.truncf %32 : vector<16x8xf32> to vector<16x8xbf16>
    %cst_19 = arith.constant dense<0.000000e+00> : vector<16x8xf32>
    %51 = tpu.matmul %49, %50, %cst_19 {dimension_numbers = #tpu.dot_dimension_numbers<[1], [0], [0], [1], [0, 0, 1, 1], [], []>} : vector<16x16xbf16>, vector<16x8xbf16>, vector<16x8xf32> -> vector<16x8xf32>
    %52 = vector.extract_strided_slice %1 {offsets = [0, 16], sizes = [16, 8], strides = [1, 1]} : vector<16x32xf32> to vector<16x8xf32>
    %53 = vector.extract_strided_slice %3 {offsets = [0, 16], sizes = [16, 8], strides = [1, 1]} : vector<16x32xf32> to vector<16x8xf32>
    %54 = vector.extract_strided_slice %5 {offsets = [0, 16], sizes = [16, 8], strides = [1, 1]} : vector<16x32xf32> to vector<16x8xf32>
    %55 = arith.truncf %52 : vector<16x8xf32> to vector<16x8xbf16>
    %56 = arith.truncf %53 : vector<16x8xf32> to vector<16x8xbf16>
    %cst_20 = arith.constant dense<0.000000e+00> : vector<16x16xf32>
    %57 = tpu.matmul %55, %56, %cst_20 {dimension_numbers = #tpu.dot_dimension_numbers<[1], [1], [0], [0], [0, 0, 1, 0], [], []>} : vector<16x8xbf16>, vector<16x8xbf16>, vector<16x16xf32> -> vector<16x16xf32>
    %cst_21 = arith.constant 5.65685415 : f32
    %58 = vector.broadcast %cst_21 : f32 to vector<16x16xf32>
    %59 = arith.mulf %57, %58 : vector<16x16xf32>
    %60 = arith.addf %59, %7 : vector<16x16xf32>
    %cst_22 = arith.constant dense<0xFF800000> : vector<16xf32>
    %61 = vector.multi_reduction <maximumf>, %60, %cst_22 [1] : vector<16x16xf32> to vector<16xf32>
    %62 = vector.shape_cast %61 : vector<16xf32> to vector<16x1xf32>
    %63 = vector.broadcast %62 : vector<16x1xf32> to vector<16x16xf32>
    %64 = arith.subf %60, %63 : vector<16x16xf32>
    %65 = math.exp %64 : vector<16x16xf32>
    %cst_23 = arith.constant dense<0.000000e+00> : vector<16xf32>
    %66 = vector.multi_reduction <add>, %65, %cst_23 [1] : vector<16x16xf32> to vector<16xf32>
    %67 = vector.shape_cast %66 : vector<16xf32> to vector<16x1xf32>
    %68 = tpu.reciprocal %67 {approx = true} : vector<16x1xf32> -> vector<16x1xf32>
    %69 = vector.broadcast %68 : vector<16x1xf32> to vector<16x16xf32>
    %70 = arith.mulf %65, %69 : vector<16x16xf32>
    %71 = arith.truncf %70 : vector<16x16xf32> to vector<16x16xbf16>
    %72 = arith.truncf %54 : vector<16x8xf32> to vector<16x8xbf16>
    %cst_24 = arith.constant dense<0.000000e+00> : vector<16x8xf32>
    %73 = tpu.matmul %71, %72, %cst_24 {dimension_numbers = #tpu.dot_dimension_numbers<[1], [0], [0], [1], [0, 0, 1, 1], [], []>} : vector<16x16xbf16>, vector<16x8xbf16>, vector<16x8xf32> -> vector<16x8xf32>
    %74 = vector.extract_strided_slice %1 {offsets = [0, 24], sizes = [16, 8], strides = [1, 1]} : vector<16x32xf32> to vector<16x8xf32>
    %75 = vector.extract_strided_slice %3 {offsets = [0, 24], sizes = [16, 8], strides = [1, 1]} : vector<16x32xf32> to vector<16x8xf32>
    %76 = vector.extract_strided_slice %5 {offsets = [0, 24], sizes = [16, 8], strides = [1, 1]} : vector<16x32xf32> to vector<16x8xf32>
    %77 = arith.truncf %74 : vector<16x8xf32> to vector<16x8xbf16>
    %78 = arith.truncf %75 : vector<16x8xf32> to vector<16x8xbf16>
    %cst_25 = arith.constant dense<0.000000e+00> : vector<16x16xf32>
    %79 = tpu.matmul %77, %78, %cst_25 {dimension_numbers = #tpu.dot_dimension_numbers<[1], [1], [0], [0], [0, 0, 1, 0], [], []>} : vector<16x8xbf16>, vector<16x8xbf16>, vector<16x16xf32> -> vector<16x16xf32>
    %cst_26 = arith.constant 5.65685415 : f32
    %80 = vector.broadcast %cst_26 : f32 to vector<16x16xf32>
    %81 = arith.mulf %79, %80 : vector<16x16xf32>
    %82 = arith.addf %81, %7 : vector<16x16xf32>
    %cst_27 = arith.constant dense<0xFF800000> : vector<16xf32>
    %83 = vector.multi_reduction <maximumf>, %82, %cst_27 [1] : vector<16x16xf32> to vector<16xf32>
    %84 = vector.shape_cast %83 : vector<16xf32> to vector<16x1xf32>
    %85 = vector.broadcast %84 : vector<16x1xf32> to vector<16x16xf32>
    %86 = arith.subf %82, %85 : vector<16x16xf32>
    %87 = math.exp %86 : vector<16x16xf32>
    %cst_28 = arith.constant dense<0.000000e+00> : vector<16xf32>
    %88 = vector.multi_reduction <add>, %87, %cst_28 [1] : vector<16x16xf32> to vector<16xf32>
    %89 = vector.shape_cast %88 : vector<16xf32> to vector<16x1xf32>
    %90 = tpu.reciprocal %89 {approx = true} : vector<16x1xf32> -> vector<16x1xf32>
    %91 = vector.broadcast %90 : vector<16x1xf32> to vector<16x16xf32>
    %92 = arith.mulf %87, %91 : vector<16x16xf32>
    %93 = arith.truncf %92 : vector<16x16xf32> to vector<16x16xbf16>
    %94 = arith.truncf %76 : vector<16x8xf32> to vector<16x8xbf16>
    %cst_29 = arith.constant dense<0.000000e+00> : vector<16x8xf32>
    %95 = tpu.matmul %93, %94, %cst_29 {dimension_numbers = #tpu.dot_dimension_numbers<[1], [0], [0], [1], [0, 0, 1, 1], [], []>} : vector<16x16xbf16>, vector<16x8xbf16>, vector<16x8xf32> -> vector<16x8xf32>
    %96 = tpu.concatenate %29, %51, %73, %95 in 1 : vector<16x8xf32>, vector<16x8xf32>, vector<16x8xf32>, vector<16x8xf32> -> vector<16x32xf32>
    %c0_30 = arith.constant 0 : index
    %c0_31 = arith.constant 0 : index
    %c0_32 = arith.constant 0 : index
    %97 = vector.load %arg5[%c0_30, %c0_31, %c0_32] : memref<1x16x32xf32, #tpu.memory_space<vmem>>, vector<1x16x32xf32>
    %98 = vector.shape_cast %97 : vector<1x16x32xf32> to vector<16x32xf32>
    %99 = vector.shape_cast %96 : vector<16x32xf32> to vector<1x16x32xf32>
    tpu.vector_store %arg5[%c0_30, %c0_31, %c0_32], %99 {strides = array<i32>} : memref<1x16x32xf32, #tpu.memory_space<vmem>>, vector<1x16x32xf32>,
    return
  }
  func.func @transform_0(%arg0: i32) -> (i32, i32, i32) {
    %c0_i32 = arith.constant 0 : i32
    %c0_i32_0 = arith.constant 0 : i32
    %c0_i32_1 = arith.constant 0 : i32
    return %arg0, %c0_i32, %c0_i32_0 : i32, i32, i32
  }
  func.func @transform_1(%arg0: i32) -> (i32, i32, i32) {
    %c0_i32 = arith.constant 0 : i32
    %c0_i32_0 = arith.constant 0 : i32
    %c0_i32_1 = arith.constant 0 : i32
    return %arg0, %c0_i32, %c0_i32_0 : i32, i32, i32
  }
  func.func @transform_2(%arg0: i32) -> (i32, i32, i32) {
    %c0_i32 = arith.constant 0 : i32
    %c0_i32_0 = arith.constant 0 : i32
    %c0_i32_1 = arith.constant 0 : i32
    return %arg0, %c0_i32, %c0_i32_0 : i32, i32, i32
  }
  func.func @transform_3(%arg0: i32) -> (i32, i32, i32) {
    %c0_i32 = arith.constant 0 : i32
    %c0_i32_0 = arith.constant 0 : i32
    %c0_i32_1 = arith.constant 0 : i32
    return %arg0, %c0_i32, %c0_i32_0 : i32, i32, i32
  }
  func.func @transform_4(%arg0: i32) -> (i32, i32, i32) {
    %c0_i32 = arith.constant 0 : i32
    %c0_i32_0 = arith.constant 0 : i32
    %c0_i32_1 = arith.constant 0 : i32
    return %arg0, %c0_i32, %c0_i32_0 : i32, i32, i32
  }
}

module attributes {stable_mosaic.version = 11 : i64} {
  func.func @_proj_res_ln_kernel(%arg0: i32, %arg1: i32, %arg2: memref<32x32xf32, #tpu.memory_space<vmem>>, %arg3: memref<32x32xf32, #tpu.memory_space<vmem>>, %arg4: memref<1x32xf32, #tpu.memory_space<vmem>>, %arg5: memref<32x32xf32, #tpu.memory_space<vmem>>, %arg6: memref<1x32xf32, #tpu.memory_space<vmem>>, %arg7: memref<1x32xf32, #tpu.memory_space<vmem>>, %arg8: memref<32x32xf32, #tpu.memory_space<vmem>>, %arg9: memref<32x32xf32, #tpu.memory_space<vmem>>) attributes {dimension_semantics = [#tpu.dimension_semantics<parallel>, #tpu.dimension_semantics<arbitrary>], iteration_bounds = array<i64: 1, 1>, scalar_prefetch = 0 : i64, scratch_operands = 1 : i64, tpu.core_type = #tpu.core_type<tc>, window_params = [{transform_indices = @transform_0, window_bounds = array<i64: 32, 32>}, {transform_indices = @transform_1, window_bounds = array<i64: 32, 32>}, {pipeline_mode = #tpu.pipeline_mode<synchronous>, transform_indices = @transform_2, window_bounds = array<i64: 1, 32>}, {transform_indices = @transform_3, window_bounds = array<i64: 32, 32>}, {pipeline_mode = #tpu.pipeline_mode<synchronous>, transform_indices = @transform_4, window_bounds = array<i64: 1, 32>}, {pipeline_mode = #tpu.pipeline_mode<synchronous>, transform_indices = @transform_5, window_bounds = array<i64: 1, 32>}, {transform_indices = @transform_6, window_bounds = array<i64: 32, 32>}]} {
    %c0_i32 = arith.constant 0 : i32
    %0 = arith.cmpi eq, %arg1, %c0_i32 : i32
    %1 = arith.extui %0 : i1 to i32
    %c0_i32_0 = arith.constant 0 : i32
    %2 = arith.cmpi ne, %1, %c0_i32_0 : i32
    scf.if %2 {
      %cst_10 = arith.constant 0.000000e+00 : f32
      %14 = vector.broadcast %cst_10 : f32 to vector<32x32xf32>
      %c0_11 = arith.constant 0 : index
      %c0_12 = arith.constant 0 : index
      %15 = vector.load %arg9[%c0_11, %c0_12] : memref<32x32xf32, #tpu.memory_space<vmem>>, vector<32x32xf32>
      tpu.vector_store %arg9[%c0_11, %c0_12], %14 {strides = array<i32>} : memref<32x32xf32, #tpu.memory_space<vmem>>, vector<32x32xf32>,
    } else {
    }
    %c0 = arith.constant 0 : index
    %c0_1 = arith.constant 0 : index
    %3 = vector.load %arg9[%c0, %c0_1] : memref<32x32xf32, #tpu.memory_space<vmem>>, vector<32x32xf32>
    %c0_2 = arith.constant 0 : index
    %c0_3 = arith.constant 0 : index
    %4 = vector.load %arg2[%c0_2, %c0_3] : memref<32x32xf32, #tpu.memory_space<vmem>>, vector<32x32xf32>
    %5 = arith.truncf %4 : vector<32x32xf32> to vector<32x32xbf16>
    %c0_4 = arith.constant 0 : index
    %c0_5 = arith.constant 0 : index
    %6 = vector.load %arg3[%c0_4, %c0_5] : memref<32x32xf32, #tpu.memory_space<vmem>>, vector<32x32xf32>
    %7 = arith.truncf %6 : vector<32x32xf32> to vector<32x32xbf16>
    %cst = arith.constant dense<0.000000e+00> : vector<32x32xf32>
    %8 = tpu.matmul %5, %7, %cst {dimension_numbers = #tpu.dot_dimension_numbers<[1], [0], [0], [1], [0, 0, 1, 1], [], []>} : vector<32x32xbf16>, vector<32x32xbf16>, vector<32x32xf32> -> vector<32x32xf32>
    %9 = arith.addf %3, %8 : vector<32x32xf32>
    %c0_6 = arith.constant 0 : index
    %c0_7 = arith.constant 0 : index
    %10 = vector.load %arg9[%c0_6, %c0_7] : memref<32x32xf32, #tpu.memory_space<vmem>>, vector<32x32xf32>
    tpu.vector_store %arg9[%c0_6, %c0_7], %9 {strides = array<i32>} : memref<32x32xf32, #tpu.memory_space<vmem>>, vector<32x32xf32>,
    %c0_i32_8 = arith.constant 0 : i32
    %11 = arith.cmpi eq, %arg1, %c0_i32_8 : i32
    %12 = arith.extui %11 : i1 to i32
    %c0_i32_9 = arith.constant 0 : i32
    %13 = arith.cmpi ne, %12, %c0_i32_9 : i32
    scf.if %13 {
      %c0_10 = arith.constant 0 : index
      %c0_11 = arith.constant 0 : index
      %14 = vector.load %arg9[%c0_10, %c0_11] : memref<32x32xf32, #tpu.memory_space<vmem>>, vector<32x32xf32>
      %c0_12 = arith.constant 0 : index
      %c0_13 = arith.constant 0 : index
      %15 = vector.load %arg4[%c0_12, %c0_13] : memref<1x32xf32, #tpu.memory_space<vmem>>, vector<1x32xf32>
      %16 = vector.broadcast %15 : vector<1x32xf32> to vector<32x32xf32>
      %17 = arith.addf %14, %16 : vector<32x32xf32>
      %c0_14 = arith.constant 0 : index
      %c0_15 = arith.constant 0 : index
      %18 = vector.load %arg5[%c0_14, %c0_15] : memref<32x32xf32, #tpu.memory_space<vmem>>, vector<32x32xf32>
      %19 = arith.addf %17, %18 : vector<32x32xf32>
      %cst_16 = arith.constant dense<0.000000e+00> : vector<32xf32>
      %20 = vector.multi_reduction <add>, %19, %cst_16 [1] : vector<32x32xf32> to vector<32xf32>
      %21 = vector.shape_cast %20 : vector<32xf32> to vector<32x1xf32>
      %cst_17 = arith.constant 3.200000e+01 : f32
      %22 = vector.broadcast %cst_17 : f32 to vector<32x1xf32>
      %23 = arith.divf %21, %22 : vector<32x1xf32>
      %24 = vector.broadcast %23 : vector<32x1xf32> to vector<32x32xf32>
      %25 = arith.subf %19, %24 : vector<32x32xf32>
      %26 = arith.mulf %25, %25 : vector<32x32xf32>
      %cst_18 = arith.constant dense<0.000000e+00> : vector<32xf32>
      %27 = vector.multi_reduction <add>, %26, %cst_18 [1] : vector<32x32xf32> to vector<32xf32>
      %28 = vector.shape_cast %27 : vector<32xf32> to vector<32x1xf32>
      %cst_19 = arith.constant 3.200000e+01 : f32
      %29 = vector.broadcast %cst_19 : f32 to vector<32x1xf32>
      %30 = arith.divf %28, %29 : vector<32x1xf32>
      %cst_20 = arith.constant 9.99999997E-7 : f32
      %31 = vector.broadcast %cst_20 : f32 to vector<32x1xf32>
      %32 = arith.addf %30, %31 : vector<32x1xf32>
      %33 = math.rsqrt %32 : vector<32x1xf32>
      %34 = vector.broadcast %33 : vector<32x1xf32> to vector<32x32xf32>
      %35 = arith.mulf %25, %34 : vector<32x32xf32>
      %c0_21 = arith.constant 0 : index
      %c0_22 = arith.constant 0 : index
      %36 = vector.load %arg6[%c0_21, %c0_22] : memref<1x32xf32, #tpu.memory_space<vmem>>, vector<1x32xf32>
      %37 = vector.broadcast %36 : vector<1x32xf32> to vector<32x32xf32>
      %38 = arith.mulf %35, %37 : vector<32x32xf32>
      %c0_23 = arith.constant 0 : index
      %c0_24 = arith.constant 0 : index
      %39 = vector.load %arg7[%c0_23, %c0_24] : memref<1x32xf32, #tpu.memory_space<vmem>>, vector<1x32xf32>
      %40 = vector.broadcast %39 : vector<1x32xf32> to vector<32x32xf32>
      %41 = arith.addf %38, %40 : vector<32x32xf32>
      %c0_25 = arith.constant 0 : index
      %c0_26 = arith.constant 0 : index
      %42 = vector.load %arg8[%c0_25, %c0_26] : memref<32x32xf32, #tpu.memory_space<vmem>>, vector<32x32xf32>
      tpu.vector_store %arg8[%c0_25, %c0_26], %41 {strides = array<i32>} : memref<32x32xf32, #tpu.memory_space<vmem>>, vector<32x32xf32>,
    } else {
    }
    return
  }
  func.func @transform_0(%arg0: i32, %arg1: i32) -> (i32, i32) {
    %c0_i32 = arith.constant 0 : i32
    return %arg0, %arg1 : i32, i32
  }
  func.func @transform_1(%arg0: i32, %arg1: i32) -> (i32, i32) {
    %c0_i32 = arith.constant 0 : i32
    %c0_i32_0 = arith.constant 0 : i32
    return %arg1, %c0_i32 : i32, i32
  }
  func.func @transform_2(%arg0: i32, %arg1: i32) -> (i32, i32) {
    %c0_i32 = arith.constant 0 : i32
    %c0_i32_0 = arith.constant 0 : i32
    %c0_i32_1 = arith.constant 0 : i32
    return %c0_i32, %c0_i32_0 : i32, i32
  }
  func.func @transform_3(%arg0: i32, %arg1: i32) -> (i32, i32) {
    %c0_i32 = arith.constant 0 : i32
    %c0_i32_0 = arith.constant 0 : i32
    return %arg0, %c0_i32 : i32, i32
  }
  func.func @transform_4(%arg0: i32, %arg1: i32) -> (i32, i32) {
    %c0_i32 = arith.constant 0 : i32
    %c0_i32_0 = arith.constant 0 : i32
    %c0_i32_1 = arith.constant 0 : i32
    return %c0_i32, %c0_i32_0 : i32, i32
  }
  func.func @transform_5(%arg0: i32, %arg1: i32) -> (i32, i32) {
    %c0_i32 = arith.constant 0 : i32
    %c0_i32_0 = arith.constant 0 : i32
    %c0_i32_1 = arith.constant 0 : i32
    return %c0_i32, %c0_i32_0 : i32, i32
  }
  func.func @transform_6(%arg0: i32, %arg1: i32) -> (i32, i32) {
    %c0_i32 = arith.constant 0 : i32
    %c0_i32_0 = arith.constant 0 : i32
    return %arg0, %c0_i32 : i32, i32
  }
}

module attributes {stable_mosaic.version = 11 : i64} {
  func.func @_matmul_nobias_kernel(%arg0: i32, %arg1: i32, %arg2: i32, %arg3: memref<32x32xf32, #tpu.memory_space<vmem>>, %arg4: memref<32x32xf32, #tpu.memory_space<vmem>>, %arg5: memref<32x32xf32, #tpu.memory_space<vmem>>, %arg6: memref<32x32xf32, #tpu.memory_space<vmem>>) attributes {dimension_semantics = [#tpu.dimension_semantics<parallel>, #tpu.dimension_semantics<parallel>, #tpu.dimension_semantics<arbitrary>], iteration_bounds = array<i64: 1, 1, 1>, scalar_prefetch = 0 : i64, scratch_operands = 1 : i64, tpu.core_type = #tpu.core_type<tc>, window_params = [{transform_indices = @transform_0, window_bounds = array<i64: 32, 32>}, {transform_indices = @transform_1, window_bounds = array<i64: 32, 32>}, {transform_indices = @transform_2, window_bounds = array<i64: 32, 32>}]} {
    %c0_i32 = arith.constant 0 : i32
    %0 = arith.cmpi eq, %arg2, %c0_i32 : i32
    %1 = arith.extui %0 : i1 to i32
    %c0_i32_0 = arith.constant 0 : i32
    %2 = arith.cmpi ne, %1, %c0_i32_0 : i32
    scf.if %2 {
      %cst_10 = arith.constant 0.000000e+00 : f32
      %14 = vector.broadcast %cst_10 : f32 to vector<32x32xf32>
      %c0_11 = arith.constant 0 : index
      %c0_12 = arith.constant 0 : index
      %15 = vector.load %arg6[%c0_11, %c0_12] : memref<32x32xf32, #tpu.memory_space<vmem>>, vector<32x32xf32>
      tpu.vector_store %arg6[%c0_11, %c0_12], %14 {strides = array<i32>} : memref<32x32xf32, #tpu.memory_space<vmem>>, vector<32x32xf32>,
    } else {
    }
    %c0 = arith.constant 0 : index
    %c0_1 = arith.constant 0 : index
    %3 = vector.load %arg6[%c0, %c0_1] : memref<32x32xf32, #tpu.memory_space<vmem>>, vector<32x32xf32>
    %c0_2 = arith.constant 0 : index
    %c0_3 = arith.constant 0 : index
    %4 = vector.load %arg3[%c0_2, %c0_3] : memref<32x32xf32, #tpu.memory_space<vmem>>, vector<32x32xf32>
    %5 = arith.truncf %4 : vector<32x32xf32> to vector<32x32xbf16>
    %c0_4 = arith.constant 0 : index
    %c0_5 = arith.constant 0 : index
    %6 = vector.load %arg4[%c0_4, %c0_5] : memref<32x32xf32, #tpu.memory_space<vmem>>, vector<32x32xf32>
    %7 = arith.truncf %6 : vector<32x32xf32> to vector<32x32xbf16>
    %cst = arith.constant dense<0.000000e+00> : vector<32x32xf32>
    %8 = tpu.matmul %5, %7, %cst {dimension_numbers = #tpu.dot_dimension_numbers<[1], [0], [0], [1], [0, 0, 1, 1], [], []>} : vector<32x32xbf16>, vector<32x32xbf16>, vector<32x32xf32> -> vector<32x32xf32>
    %9 = arith.addf %3, %8 : vector<32x32xf32>
    %c0_6 = arith.constant 0 : index
    %c0_7 = arith.constant 0 : index
    %10 = vector.load %arg6[%c0_6, %c0_7] : memref<32x32xf32, #tpu.memory_space<vmem>>, vector<32x32xf32>
    tpu.vector_store %arg6[%c0_6, %c0_7], %9 {strides = array<i32>} : memref<32x32xf32, #tpu.memory_space<vmem>>, vector<32x32xf32>,
    %c0_i32_8 = arith.constant 0 : i32
    %11 = arith.cmpi eq, %arg2, %c0_i32_8 : i32
    %12 = arith.extui %11 : i1 to i32
    %c0_i32_9 = arith.constant 0 : i32
    %13 = arith.cmpi ne, %12, %c0_i32_9 : i32
    scf.if %13 {
      %c0_10 = arith.constant 0 : index
      %c0_11 = arith.constant 0 : index
      %14 = vector.load %arg6[%c0_10, %c0_11] : memref<32x32xf32, #tpu.memory_space<vmem>>, vector<32x32xf32>
      %c0_12 = arith.constant 0 : index
      %c0_13 = arith.constant 0 : index
      %15 = vector.load %arg5[%c0_12, %c0_13] : memref<32x32xf32, #tpu.memory_space<vmem>>, vector<32x32xf32>
      tpu.vector_store %arg5[%c0_12, %c0_13], %14 {strides = array<i32>} : memref<32x32xf32, #tpu.memory_space<vmem>>, vector<32x32xf32>,
    } else {
    }
    return
  }
  func.func @transform_0(%arg0: i32, %arg1: i32, %arg2: i32) -> (i32, i32) {
    %c0_i32 = arith.constant 0 : i32
    return %arg0, %arg2 : i32, i32
  }
  func.func @transform_1(%arg0: i32, %arg1: i32, %arg2: i32) -> (i32, i32) {
    %c0_i32 = arith.constant 0 : i32
    return %arg2, %arg1 : i32, i32
  }
  func.func @transform_2(%arg0: i32, %arg1: i32, %arg2: i32) -> (i32, i32) {
    %c0_i32 = arith.constant 0 : i32
    return %arg0, %arg1 : i32, i32
  }
}

module attributes {stable_mosaic.version = 11 : i64} {
  func.func @_matmul_nobias_kernel(%arg0: i32, %arg1: i32, %arg2: i32, %arg3: memref<32x32xf32, #tpu.memory_space<vmem>>, %arg4: memref<32x64xf32, #tpu.memory_space<vmem>>, %arg5: memref<32x64xf32, #tpu.memory_space<vmem>>, %arg6: memref<32x64xf32, #tpu.memory_space<vmem>>) attributes {dimension_semantics = [#tpu.dimension_semantics<parallel>, #tpu.dimension_semantics<parallel>, #tpu.dimension_semantics<arbitrary>], iteration_bounds = array<i64: 1, 1, 1>, scalar_prefetch = 0 : i64, scratch_operands = 1 : i64, tpu.core_type = #tpu.core_type<tc>, window_params = [{transform_indices = @transform_0, window_bounds = array<i64: 32, 32>}, {transform_indices = @transform_1, window_bounds = array<i64: 32, 64>}, {transform_indices = @transform_2, window_bounds = array<i64: 32, 64>}]} {
    %c0_i32 = arith.constant 0 : i32
    %0 = arith.cmpi eq, %arg2, %c0_i32 : i32
    %1 = arith.extui %0 : i1 to i32
    %c0_i32_0 = arith.constant 0 : i32
    %2 = arith.cmpi ne, %1, %c0_i32_0 : i32
    scf.if %2 {
      %cst_10 = arith.constant 0.000000e+00 : f32
      %14 = vector.broadcast %cst_10 : f32 to vector<32x64xf32>
      %c0_11 = arith.constant 0 : index
      %c0_12 = arith.constant 0 : index
      %15 = vector.load %arg6[%c0_11, %c0_12] : memref<32x64xf32, #tpu.memory_space<vmem>>, vector<32x64xf32>
      tpu.vector_store %arg6[%c0_11, %c0_12], %14 {strides = array<i32>} : memref<32x64xf32, #tpu.memory_space<vmem>>, vector<32x64xf32>,
    } else {
    }
    %c0 = arith.constant 0 : index
    %c0_1 = arith.constant 0 : index
    %3 = vector.load %arg6[%c0, %c0_1] : memref<32x64xf32, #tpu.memory_space<vmem>>, vector<32x64xf32>
    %c0_2 = arith.constant 0 : index
    %c0_3 = arith.constant 0 : index
    %4 = vector.load %arg3[%c0_2, %c0_3] : memref<32x32xf32, #tpu.memory_space<vmem>>, vector<32x32xf32>
    %5 = arith.truncf %4 : vector<32x32xf32> to vector<32x32xbf16>
    %c0_4 = arith.constant 0 : index
    %c0_5 = arith.constant 0 : index
    %6 = vector.load %arg4[%c0_4, %c0_5] : memref<32x64xf32, #tpu.memory_space<vmem>>, vector<32x64xf32>
    %7 = arith.truncf %6 : vector<32x64xf32> to vector<32x64xbf16>
    %cst = arith.constant dense<0.000000e+00> : vector<32x64xf32>
    %8 = tpu.matmul %5, %7, %cst {dimension_numbers = #tpu.dot_dimension_numbers<[1], [0], [0], [1], [0, 0, 1, 1], [], []>} : vector<32x32xbf16>, vector<32x64xbf16>, vector<32x64xf32> -> vector<32x64xf32>
    %9 = arith.addf %3, %8 : vector<32x64xf32>
    %c0_6 = arith.constant 0 : index
    %c0_7 = arith.constant 0 : index
    %10 = vector.load %arg6[%c0_6, %c0_7] : memref<32x64xf32, #tpu.memory_space<vmem>>, vector<32x64xf32>
    tpu.vector_store %arg6[%c0_6, %c0_7], %9 {strides = array<i32>} : memref<32x64xf32, #tpu.memory_space<vmem>>, vector<32x64xf32>,
    %c0_i32_8 = arith.constant 0 : i32
    %11 = arith.cmpi eq, %arg2, %c0_i32_8 : i32
    %12 = arith.extui %11 : i1 to i32
    %c0_i32_9 = arith.constant 0 : i32
    %13 = arith.cmpi ne, %12, %c0_i32_9 : i32
    scf.if %13 {
      %c0_10 = arith.constant 0 : index
      %c0_11 = arith.constant 0 : index
      %14 = vector.load %arg6[%c0_10, %c0_11] : memref<32x64xf32, #tpu.memory_space<vmem>>, vector<32x64xf32>
      %c0_12 = arith.constant 0 : index
      %c0_13 = arith.constant 0 : index
      %15 = vector.load %arg5[%c0_12, %c0_13] : memref<32x64xf32, #tpu.memory_space<vmem>>, vector<32x64xf32>
      tpu.vector_store %arg5[%c0_12, %c0_13], %14 {strides = array<i32>} : memref<32x64xf32, #tpu.memory_space<vmem>>, vector<32x64xf32>,
    } else {
    }
    return
  }
  func.func @transform_0(%arg0: i32, %arg1: i32, %arg2: i32) -> (i32, i32) {
    %c0_i32 = arith.constant 0 : i32
    return %arg0, %arg2 : i32, i32
  }
  func.func @transform_1(%arg0: i32, %arg1: i32, %arg2: i32) -> (i32, i32) {
    %c0_i32 = arith.constant 0 : i32
    return %arg2, %arg1 : i32, i32
  }
  func.func @transform_2(%arg0: i32, %arg1: i32, %arg2: i32) -> (i32, i32) {
    %c0_i32 = arith.constant 0 : i32
    return %arg0, %arg1 : i32, i32
  }
}

module attributes {stable_mosaic.version = 11 : i64} {
  func.func @_matmul_bias_kernel(%arg0: i32, %arg1: i32, %arg2: i32, %arg3: memref<32x32xf32, #tpu.memory_space<vmem>>, %arg4: memref<32x32xf32, #tpu.memory_space<vmem>>, %arg5: memref<1x32xf32, #tpu.memory_space<vmem>>, %arg6: memref<32x32xf32, #tpu.memory_space<vmem>>, %arg7: memref<32x32xf32, #tpu.memory_space<vmem>>) attributes {dimension_semantics = [#tpu.dimension_semantics<parallel>, #tpu.dimension_semantics<parallel>, #tpu.dimension_semantics<arbitrary>], iteration_bounds = array<i64: 1, 1, 1>, scalar_prefetch = 0 : i64, scratch_operands = 1 : i64, tpu.core_type = #tpu.core_type<tc>, window_params = [{transform_indices = @transform_0, window_bounds = array<i64: 32, 32>}, {transform_indices = @transform_1, window_bounds = array<i64: 32, 32>}, {transform_indices = @transform_2, window_bounds = array<i64: 1, 32>}, {transform_indices = @transform_3, window_bounds = array<i64: 32, 32>}]} {
    %c0_i32 = arith.constant 0 : i32
    %0 = arith.cmpi eq, %arg2, %c0_i32 : i32
    %1 = arith.extui %0 : i1 to i32
    %c0_i32_0 = arith.constant 0 : i32
    %2 = arith.cmpi ne, %1, %c0_i32_0 : i32
    scf.if %2 {
      %cst_10 = arith.constant 0.000000e+00 : f32
      %14 = vector.broadcast %cst_10 : f32 to vector<32x32xf32>
      %c0_11 = arith.constant 0 : index
      %c0_12 = arith.constant 0 : index
      %15 = vector.load %arg7[%c0_11, %c0_12] : memref<32x32xf32, #tpu.memory_space<vmem>>, vector<32x32xf32>
      tpu.vector_store %arg7[%c0_11, %c0_12], %14 {strides = array<i32>} : memref<32x32xf32, #tpu.memory_space<vmem>>, vector<32x32xf32>,
    } else {
    }
    %c0 = arith.constant 0 : index
    %c0_1 = arith.constant 0 : index
    %3 = vector.load %arg7[%c0, %c0_1] : memref<32x32xf32, #tpu.memory_space<vmem>>, vector<32x32xf32>
    %c0_2 = arith.constant 0 : index
    %c0_3 = arith.constant 0 : index
    %4 = vector.load %arg3[%c0_2, %c0_3] : memref<32x32xf32, #tpu.memory_space<vmem>>, vector<32x32xf32>
    %5 = arith.truncf %4 : vector<32x32xf32> to vector<32x32xbf16>
    %c0_4 = arith.constant 0 : index
    %c0_5 = arith.constant 0 : index
    %6 = vector.load %arg4[%c0_4, %c0_5] : memref<32x32xf32, #tpu.memory_space<vmem>>, vector<32x32xf32>
    %7 = arith.truncf %6 : vector<32x32xf32> to vector<32x32xbf16>
    %cst = arith.constant dense<0.000000e+00> : vector<32x32xf32>
    %8 = tpu.matmul %5, %7, %cst {dimension_numbers = #tpu.dot_dimension_numbers<[1], [0], [0], [1], [0, 0, 1, 1], [], []>} : vector<32x32xbf16>, vector<32x32xbf16>, vector<32x32xf32> -> vector<32x32xf32>
    %9 = arith.addf %3, %8 : vector<32x32xf32>
    %c0_6 = arith.constant 0 : index
    %c0_7 = arith.constant 0 : index
    %10 = vector.load %arg7[%c0_6, %c0_7] : memref<32x32xf32, #tpu.memory_space<vmem>>, vector<32x32xf32>
    tpu.vector_store %arg7[%c0_6, %c0_7], %9 {strides = array<i32>} : memref<32x32xf32, #tpu.memory_space<vmem>>, vector<32x32xf32>,
    %c0_i32_8 = arith.constant 0 : i32
    %11 = arith.cmpi eq, %arg2, %c0_i32_8 : i32
    %12 = arith.extui %11 : i1 to i32
    %c0_i32_9 = arith.constant 0 : i32
    %13 = arith.cmpi ne, %12, %c0_i32_9 : i32
    scf.if %13 {
      %c0_10 = arith.constant 0 : index
      %c0_11 = arith.constant 0 : index
      %14 = vector.load %arg7[%c0_10, %c0_11] : memref<32x32xf32, #tpu.memory_space<vmem>>, vector<32x32xf32>
      %c0_12 = arith.constant 0 : index
      %c0_13 = arith.constant 0 : index
      %15 = vector.load %arg5[%c0_12, %c0_13] : memref<1x32xf32, #tpu.memory_space<vmem>>, vector<1x32xf32>
      %16 = vector.broadcast %15 : vector<1x32xf32> to vector<32x32xf32>
      %17 = arith.addf %14, %16 : vector<32x32xf32>
      %c0_14 = arith.constant 0 : index
      %c0_15 = arith.constant 0 : index
      %18 = vector.load %arg6[%c0_14, %c0_15] : memref<32x32xf32, #tpu.memory_space<vmem>>, vector<32x32xf32>
      tpu.vector_store %arg6[%c0_14, %c0_15], %17 {strides = array<i32>} : memref<32x32xf32, #tpu.memory_space<vmem>>, vector<32x32xf32>,
    } else {
    }
    return
  }
  func.func @transform_0(%arg0: i32, %arg1: i32, %arg2: i32) -> (i32, i32) {
    %c0_i32 = arith.constant 0 : i32
    return %arg0, %arg2 : i32, i32
  }
  func.func @transform_1(%arg0: i32, %arg1: i32, %arg2: i32) -> (i32, i32) {
    %c0_i32 = arith.constant 0 : i32
    return %arg2, %arg1 : i32, i32
  }
  func.func @transform_2(%arg0: i32, %arg1: i32, %arg2: i32) -> (i32, i32) {
    %c0_i32 = arith.constant 0 : i32
    %c0_i32_0 = arith.constant 0 : i32
    return %c0_i32, %arg1 : i32, i32
  }
  func.func @transform_3(%arg0: i32, %arg1: i32, %arg2: i32) -> (i32, i32) {
    %c0_i32 = arith.constant 0 : i32
    return %arg0, %arg1 : i32, i32
  }
}

module attributes {stable_mosaic.version = 11 : i64} {
  func.func @_matmul_bias_kernel(%arg0: i32, %arg1: i32, %arg2: i32, %arg3: memref<32x32xf32, #tpu.memory_space<vmem>>, %arg4: memref<32x32xf32, #tpu.memory_space<vmem>>, %arg5: memref<1x32xf32, #tpu.memory_space<vmem>>, %arg6: memref<32x32xf32, #tpu.memory_space<vmem>>, %arg7: memref<32x32xf32, #tpu.memory_space<vmem>>) attributes {dimension_semantics = [#tpu.dimension_semantics<parallel>, #tpu.dimension_semantics<parallel>, #tpu.dimension_semantics<arbitrary>], iteration_bounds = array<i64: 1, 1, 1>, scalar_prefetch = 0 : i64, scratch_operands = 1 : i64, tpu.core_type = #tpu.core_type<tc>, window_params = [{transform_indices = @transform_0, window_bounds = array<i64: 32, 32>}, {transform_indices = @transform_1, window_bounds = array<i64: 32, 32>}, {transform_indices = @transform_2, window_bounds = array<i64: 1, 32>}, {transform_indices = @transform_3, window_bounds = array<i64: 32, 32>}]} {
    %c0_i32 = arith.constant 0 : i32
    %0 = arith.cmpi eq, %arg2, %c0_i32 : i32
    %1 = arith.extui %0 : i1 to i32
    %c0_i32_0 = arith.constant 0 : i32
    %2 = arith.cmpi ne, %1, %c0_i32_0 : i32
    scf.if %2 {
      %cst_10 = arith.constant 0.000000e+00 : f32
      %14 = vector.broadcast %cst_10 : f32 to vector<32x32xf32>
      %c0_11 = arith.constant 0 : index
      %c0_12 = arith.constant 0 : index
      %15 = vector.load %arg7[%c0_11, %c0_12] : memref<32x32xf32, #tpu.memory_space<vmem>>, vector<32x32xf32>
      tpu.vector_store %arg7[%c0_11, %c0_12], %14 {strides = array<i32>} : memref<32x32xf32, #tpu.memory_space<vmem>>, vector<32x32xf32>,
    } else {
    }
    %c0 = arith.constant 0 : index
    %c0_1 = arith.constant 0 : index
    %3 = vector.load %arg7[%c0, %c0_1] : memref<32x32xf32, #tpu.memory_space<vmem>>, vector<32x32xf32>
    %c0_2 = arith.constant 0 : index
    %c0_3 = arith.constant 0 : index
    %4 = vector.load %arg3[%c0_2, %c0_3] : memref<32x32xf32, #tpu.memory_space<vmem>>, vector<32x32xf32>
    %5 = arith.truncf %4 : vector<32x32xf32> to vector<32x32xbf16>
    %c0_4 = arith.constant 0 : index
    %c0_5 = arith.constant 0 : index
    %6 = vector.load %arg4[%c0_4, %c0_5] : memref<32x32xf32, #tpu.memory_space<vmem>>, vector<32x32xf32>
    %7 = arith.truncf %6 : vector<32x32xf32> to vector<32x32xbf16>
    %cst = arith.constant dense<0.000000e+00> : vector<32x32xf32>
    %8 = tpu.matmul %5, %7, %cst {dimension_numbers = #tpu.dot_dimension_numbers<[1], [0], [0], [1], [0, 0, 1, 1], [], []>} : vector<32x32xbf16>, vector<32x32xbf16>, vector<32x32xf32> -> vector<32x32xf32>
    %9 = arith.addf %3, %8 : vector<32x32xf32>
    %c0_6 = arith.constant 0 : index
    %c0_7 = arith.constant 0 : index
    %10 = vector.load %arg7[%c0_6, %c0_7] : memref<32x32xf32, #tpu.memory_space<vmem>>, vector<32x32xf32>
    tpu.vector_store %arg7[%c0_6, %c0_7], %9 {strides = array<i32>} : memref<32x32xf32, #tpu.memory_space<vmem>>, vector<32x32xf32>,
    %c0_i32_8 = arith.constant 0 : i32
    %11 = arith.cmpi eq, %arg2, %c0_i32_8 : i32
    %12 = arith.extui %11 : i1 to i32
    %c0_i32_9 = arith.constant 0 : i32
    %13 = arith.cmpi ne, %12, %c0_i32_9 : i32
    scf.if %13 {
      %c0_10 = arith.constant 0 : index
      %c0_11 = arith.constant 0 : index
      %14 = vector.load %arg7[%c0_10, %c0_11] : memref<32x32xf32, #tpu.memory_space<vmem>>, vector<32x32xf32>
      %c0_12 = arith.constant 0 : index
      %c0_13 = arith.constant 0 : index
      %15 = vector.load %arg5[%c0_12, %c0_13] : memref<1x32xf32, #tpu.memory_space<vmem>>, vector<1x32xf32>
      %16 = vector.broadcast %15 : vector<1x32xf32> to vector<32x32xf32>
      %17 = arith.addf %14, %16 : vector<32x32xf32>
      %c0_14 = arith.constant 0 : index
      %c0_15 = arith.constant 0 : index
      %18 = vector.load %arg6[%c0_14, %c0_15] : memref<32x32xf32, #tpu.memory_space<vmem>>, vector<32x32xf32>
      tpu.vector_store %arg6[%c0_14, %c0_15], %17 {strides = array<i32>} : memref<32x32xf32, #tpu.memory_space<vmem>>, vector<32x32xf32>,
    } else {
    }
    return
  }
  func.func @transform_0(%arg0: i32, %arg1: i32, %arg2: i32) -> (i32, i32) {
    %c0_i32 = arith.constant 0 : i32
    return %arg0, %arg2 : i32, i32
  }
  func.func @transform_1(%arg0: i32, %arg1: i32, %arg2: i32) -> (i32, i32) {
    %c0_i32 = arith.constant 0 : i32
    return %arg2, %arg1 : i32, i32
  }
  func.func @transform_2(%arg0: i32, %arg1: i32, %arg2: i32) -> (i32, i32) {
    %c0_i32 = arith.constant 0 : i32
    %c0_i32_0 = arith.constant 0 : i32
    return %c0_i32, %arg1 : i32, i32
  }
  func.func @transform_3(%arg0: i32, %arg1: i32, %arg2: i32) -> (i32, i32) {
    %c0_i32 = arith.constant 0 : i32
    return %arg0, %arg1 : i32, i32
  }
}

</mosaic_0001>

<bundles_post_ra>
// kernel: decoder_forward.17
= control target key start
LH: loop header
LB: loop body
LE: loop exit
PB: predicated region body
PF: predicated region fallthrough
CT: control target
= control target key end

     0   :  { %vm29_vm0 = vcmask 261120   ;;  %s202_s0 = inlined_call_operand.vmem [shape: f32[32,32], index: 0, kind: input, shape index: {}]   ;;  %s203_s1 = inlined_call_operand.vmem [shape: f32[32,32], index: 1, kind: input, shape index: {}]   ;;  %s204_s2 = inlined_call_operand.vmem [shape: f32[1,32], index: 2, kind: input, shape index: {}]   ;;  %s205_s3 = inlined_call_operand.vmem [shape: f32[1,32], index: 3, kind: input, shape index: {}]   ;;  %s206_s4 = inlined_call_operand.vmem [shape: f32[32,32], index: 4, kind: output, shape index: {}]  }
   0x1   :  { %v17_v0 = vld [vmem:[%s202_s0] sm:$0xff]  ;;  %v19_v2 = vld [vmem:[%s202_s0 + $0x10] sm:$0xff]  ;;  %v18_v5 = vld [vmem:[%s202_s0 + $0x8] sm:$0xff] }
   0x2   :  { %v21_v1 = vld [vmem:[%s203_s1] sm:$0xff]  ;;  %v23_v4 = vld [vmem:[%s203_s1 + $0x10] sm:$0xff]  ;;  %v22_v6 = vld [vmem:[%s203_s1 + $0x8] sm:$0xff] }
   0x3   :  { %v25_v3 = vadd.f32 %v21_v1, %v17_v0  ;;  %v27_v7 = vadd.f32 %v23_v4, %v19_v2  ;;  %v26_v8 = vadd.f32 %v22_v6, %v18_v5  ;;  %v20_v9 = vld [vmem:[%s202_s0 + $0x18] sm:$0xff]  ;;  %v113_v49 = vld [vmem:[%s204_s2] ss:$0 sm:$0xff] }
   0x4   :  { %v24_v10 = vld [vmem:[%s203_s1 + $0x18] sm:$0xff]  ;;  %v114_v51 = vld [vmem:[%s205_s3] ss:$0 sm:$0xff] }
   0x5   :  { %v30_v11 = vsel %vm29_vm0, %v25_v3, 0.0  ;;  %v28_v12 = vadd.f32 %v24_v10, %v20_v9  ;;  %v36_v13 = vsel %vm29_vm0, %v27_v7, 0.0  ;;  %v33_v14 = vsel %vm29_vm0, %v26_v8, 0.0 }
   0x6   :  { %31 = vadd.xlane.f32.xlu0 %v30_v11  ;;  %37 = vadd.xlane.f32.xlu1 %v36_v13 }
   0x7   :  { %v39_v15 = vsel %vm29_vm0, %v28_v12, 0.0 }
   0xa   :  { %34 = vadd.xlane.f32.xlu0 %v33_v14  ;;  %40 = vadd.xlane.f32.xlu1 %v39_v15 }
  0x93   :  { %v32_v16 = vpop.xlane.xlu0 %31  ;;  %v38_v18 = vpop.xlane.xlu1 %37 }
  0x94   :  { %v43_v17 = vmul.f32 0.03125, %v32_v16  ;;  %v45_v19 = vmul.f32 0.03125, %v38_v18 }
  0x96   :  { %v47_v20 = vsub.f32 %v25_v3, %v43_v17  ;;  %v49_v21 = vsub.f32 %v27_v7, %v45_v19 }
  0x97   :  { %v35_v22 = vpop.xlane.xlu0 %34  ;;  %v41_v24 = vpop.xlane.xlu1 %40 }
  0x98   :  { %v44_v23 = vmul.f32 0.03125, %v35_v22  ;;  %v51_v25 = vmul.f32 %v47_v20, %v47_v20  ;;  %v46_v26 = vmul.f32 0.03125, %v41_v24  ;;  %v53_v27 = vmul.f32 %v49_v21, %v49_v21 }
  0x9a   :  { %v48_v28 = vsub.f32 %v26_v8, %v44_v23  ;;  %v55_v29 = vsel %vm29_vm0, %v51_v25, 0.0  ;;  %v50_v30 = vsub.f32 %v28_v12, %v46_v26  ;;  %v61_v31 = vsel %vm29_vm0, %v53_v27, 0.0 }
  0x9b   :  { %56 = vadd.xlane.f32.xlu0 %v55_v29 }
  0x9c   :  { %v52_v32 = vmul.f32 %v48_v28, %v48_v28  ;;  %v54_v33 = vmul.f32 %v50_v30, %v50_v30 }
  0x9e   :  { %v58_v34 = vsel %vm29_vm0, %v52_v32, 0.0  ;;  %v64_v35 = vsel %vm29_vm0, %v54_v33, 0.0 }
  0x9f   :  { %62 = vadd.xlane.f32.xlu0 %v61_v31  ;;  %59 = vadd.xlane.f32.xlu1 %v58_v34 }
  0xa3   :  { %65 = vadd.xlane.f32.xlu1 %v64_v35 }
 0x128   :  { %v57_v36 = vpop.xlane.xlu0 %56 }
 0x129   :  { %v67_v37 = vmul.f32 0.03125, %v57_v36 }
 0x12b   :  { %v71_v38 = vadd.f32 1e-06, %v67_v37 }
 0x12c   :  { %v60_v39 = vpop.xlane.xlu1 %59  ;;  %v63_v40 = vpop.xlane.xlu0 %62 }
 0x12d   :  { %115 = vrsqrt.f32 %v71_v38  ;;  %v68_v41 = vmul.f32 0.03125, %v60_v39  ;;  %v69_v42 = vmul.f32 0.03125, %v63_v40 }
 0x12f   :  { %v72_v43 = vadd.f32 1e-06, %v68_v41  ;;  %v73_v44 = vadd.f32 1e-06, %v69_v42 }
 0x130   :  { %v66_v45 = vpop.xlane.xlu1 %65 }
 0x131   :  { %117 = vrsqrt.f32 %v72_v43  ;;  %v70_v46 = vmul.f32 0.03125, %v66_v45 }
 0x132   :  { %119 = vrsqrt.f32 %v73_v44 }
 0x133   :  { %v74_v47 = vadd.f32 1e-06, %v70_v46 }
 0x135   :  { %121 = vrsqrt.f32 %v74_v47 }
 0x137   :  { %v116_v48 = vpop.eup %115 }
 0x138   :  { %v79_v50 = vmul.f32 %v116_v48, %v47_v20 }
 0x13a   :  { %v90_v52 = vmul.f32 %v113_v49, %v79_v50 }
 0x13b   :  { %v118_v53 = vpop.eup %117 }
 0x13c   :  { %v120_v54 = vpop.eup %119  ;;  %v101_v55 = vadd.f32 %v114_v51, %v90_v52  ;;  %v80_v56 = vmul.f32 %v118_v53, %v48_v28 }
 0x13d   :  { %v81_v57 = vmul.f32 %v120_v54, %v49_v21 }
 0x13e   :  { %105 = vst.msk [vmem:[%s206_s4] sm:$0xff] %vm29_vm0, %v101_v55  ;;  %v91_v58 = vmul.f32 %v113_v49, %v80_v56 }
 0x13f   :  { %v122_v59 = vpop.eup %121  ;;  %v92_v60 = vmul.f32 %v113_v49, %v81_v57 }
 0x140   :  { %v102_v61 = vadd.f32 %v114_v51, %v91_v58  ;;  %v82_v62 = vmul.f32 %v122_v59, %v50_v30 }
 0x141   :  { %v103_v63 = vadd.f32 %v114_v51, %v92_v60 }
 0x142   :  { %106 = vst.msk [vmem:[%s206_s4 + $0x8] sm:$0xff] %vm29_vm0, %v102_v61  ;;  %v93_v0 = vmul.f32 %v113_v49, %v82_v62 }
 0x143   :  { %107 = vst.msk [vmem:[%s206_s4 + $0x10] sm:$0xff] %vm29_vm0, %v103_v63 }
 0x144   :  { %v104_v1 = vadd.f32 %v114_v51, %v93_v0 }
 0x146   :  { %108 = vst.msk [vmem:[%s206_s4 + $0x18] sm:$0xff] %vm29_vm0, %v104_v1 }

// kernel: decoder_forward.18
= control target key start
LH: loop header
LB: loop body
LE: loop exit
PB: predicated region body
PF: predicated region fallthrough
CT: control target
= control target key end

     0   :  { %vm16_vm0 = vcmask 785408   ;;  %v132_v3 = vmov 0.0   ;;  %vm37_vm1 = vcmask 261120   ;;  %s196_s1 = inlined_call_operand.vmem [shape: f32[32,96], index: 1, kind: input, shape index: {}]   ;;  %s197_s0 = inlined_call_operand.vmem [shape: f32[32,32], index: 0, kind: input, shape index: {}]   ;;  %s198_s2 = inlined_call_operand.vmem [shape: f32[32,96], index: 2, kind: output, shape index: {}]  }
   0x1   :  { %v31_v0 = vld [vmem:[%s196_s1] sm:$0xff]  ;;  %v32_v1 = vld [vmem:[%s196_s1 + $0x8] sm:$0xff]  ;;  %v33_v2 = vld [vmem:[%s196_s1 + $0x10] sm:$0xff]  ;;  %19 = vst.msk [vmem:[#allocation2 + $0x10] sm:$0xff] %vm16_vm0, %v132_v3 }
   0x2   :  { %17 = vst.msk [vmem:[#allocation2] sm:$0xff] %vm16_vm0, %v132_v3  ;;  %18 = vst.msk [vmem:[#allocation2 + $0x8] sm:$0xff] %vm16_vm0, %v132_v3  ;;  %v35_v4 = vpack.c.bf16 %v32_v1, %v31_v0  ;;  %v34_v5 = vld [vmem:[%s196_s1 + $0x18] sm:$0xff]  ;;  %v25_v6 = vld [vmem:[%s197_s0] sm:$0xff] }
   0x3   :  { %20 = vst.msk [vmem:[#allocation2 + $0x18] sm:$0xff] %vm16_vm0, %v132_v3  ;;  %v26_v7 = vld [vmem:[%s197_s0 + $0x8] sm:$0xff]  ;;  %v36_v8 = vpack.c.bf16 %v34_v5, %v33_v2  ;;  %v27_v10 = vld [vmem:[%s197_s0 + $0x10] sm:$0xff]  ;;  %v28_v11 = vld [vmem:[%s197_s0 + $0x18] sm:$0xff] }
   0x4   :  { %v29_v9 = vpack.c.bf16 %v26_v7, %v25_v6  ;;  %123 = vmatprep.subr.bf16.mxu0 %v35_v4  ;;  %v30_v12 = vpack.c.bf16 %v28_v11, %v27_v10 }
   0x5   :  { %124 = vmatpush3.bf16.msra.mxu0 %v35_v4 }
   0x6   :  { %127 = vmatprep.mubr.msk.bf16.mxu0 %vm37_vm1, %v29_v9  ;;  %125 = vmatprep.subr.bf16.mxu0 %v36_v8 }
   0x8   :  { %v23_v13 = vld [vmem:[#allocation2 + $0x10] sm:$0xff] }
   0x9   :  { %126 = vmatpush3.bf16.msra.mxu0 %v36_v8  ;;  %v21_v14 = vld [vmem:[#allocation2] sm:$0xff]  ;;  %v22_v19 = vld [vmem:[#allocation2 + $0x8] sm:$0xff] }
   0xa   :  { %v24_v16 = vld [vmem:[#allocation2 + $0x18] sm:$0xff] }
   0xc   :  { %128 = vmatmul.mubr.msk.bf16.vlgmr.msra.gmra.mrb[0].mxu0 %vm37_vm1, %v30_v12 }
  0xdf   :  { %v129_v15 = vpop.f32.mrb[0].mxu0 }
  0xe0   :  { %v95_v17 = vadd.f32 %v129_v15, %v23_v13  ;;  %v78_v18 = vpop.f32.mrb[1].mxu0 }
  0xe1   :  { %v93_v20 = vadd.f32 %v78_v18, %v21_v14  ;;  %v130_v21 = vpop.f32.mrb[2].mxu0 }
  0xe2   :  { %100 = vst.msk [vmem:[#allocation2 + $0x10] sm:$0xff] %vm16_vm0, %v95_v17  ;;  %v96_v22 = vadd.f32 %v130_v21, %v24_v16  ;;  %v81_v23 = vpop.f32.mrb[3].mxu0 }
  0xe3   :  { %98 = vst.msk [vmem:[#allocation2] sm:$0xff] %vm16_vm0, %v93_v20  ;;  %v94_v24 = vadd.f32 %v81_v23, %v22_v19 }
  0xe4   :  { %101 = vst.msk [vmem:[#allocation2 + $0x18] sm:$0xff] %vm16_vm0, %v96_v22 }
  0xe5   :  { %99 = vst.msk [vmem:[#allocation2 + $0x8] sm:$0xff] %vm16_vm0, %v94_v24 }
  0xe9   :  { %v107_v25 = vld [vmem:[#allocation2 + $0x10] sm:$0xff] }
  0xea   :  { %111 = vst.msk [vmem:[%s198_s2 + $0x10] sm:$0xff] %vm16_vm0, %v107_v25  ;;  %v105_v26 = vld [vmem:[#allocation2] sm:$0xff] }
  0xeb   :  { %109 = vst.msk [vmem:[%s198_s2] sm:$0xff] %vm16_vm0, %v105_v26  ;;  %v108_v27 = vld [vmem:[#allocation2 + $0x18] sm:$0xff] }
  0xec   :  { %112 = vst.msk [vmem:[%s198_s2 + $0x18] sm:$0xff] %vm16_vm0, %v108_v27  ;;  %v106_v28 = vld [vmem:[#allocation2 + $0x8] sm:$0xff] }
  0xed   :  { %110 = vst.msk [vmem:[%s198_s2 + $0x8] sm:$0xff] %vm16_vm0, %v106_v28 }

// kernel: decoder_forward.20
= control target key start
LH: loop header
LB: loop body
LE: loop exit
PB: predicated region body
PF: predicated region fallthrough
CT: control target
= control target key end

     0   :  { %vm28_vm0 = vcmask 261120   ;;  %v248_v3 = vmov 0.0   ;;  %s363_s1 = inlined_call_operand.vmem [shape: f32[32,32], index: 1, kind: input, shape index: {}]   ;;  %s364_s0 = inlined_call_operand.vmem [shape: f32[32,32], index: 0, kind: input, shape index: {}]   ;;  %s365_s2 = inlined_call_operand.vmem [shape: f32[1,32], index: 2, kind: input, shape index: {}]   ;;  %s366_s3 = inlined_call_operand.vmem [shape: f32[32,32], index: 3, kind: input, shape index: {}]   ;;  %s367_s4 = inlined_call_operand.vmem [shape: f32[1,32], index: 4, kind: input, shape index: {}]   ;;  %s368_s5 = inlined_call_operand.vmem [shape: f32[1,32], index: 5, kind: input, shape index: {}]   ;;  %s369_s6 = inlined_call_operand.vmem [shape: f32[32,32], index: 6, kind: output, shape index: {}]  }
   0x1   :  { %v43_v0 = vld [vmem:[%s363_s1] sm:$0xff]  ;;  %v44_v1 = vld [vmem:[%s363_s1 + $0x8] sm:$0xff]  ;;  %v45_v2 = vld [vmem:[%s363_s1 + $0x10] sm:$0xff]  ;;  %31 = vst.msk [vmem:[#allocation2 + $0x10] sm:$0xff] %vm28_vm0, %v248_v3 }
   0x2   :  { %29 = vst.msk [vmem:[#allocation2] sm:$0xff] %vm28_vm0, %v248_v3  ;;  %30 = vst.msk [vmem:[#allocation2 + $0x8] sm:$0xff] %vm28_vm0, %v248_v3  ;;  %v47_v4 = vpack.c.bf16 %v44_v1, %v43_v0  ;;  %v46_v5 = vld [vmem:[%s363_s1 + $0x18] sm:$0xff]  ;;  %v37_v6 = vld [vmem:[%s364_s0] sm:$0xff] }
   0x3   :  { %32 = vst.msk [vmem:[#allocation2 + $0x18] sm:$0xff] %vm28_vm0, %v248_v3  ;;  %v38_v7 = vld [vmem:[%s364_s0 + $0x8] sm:$0xff]  ;;  %v48_v8 = vpack.c.bf16 %v46_v5, %v45_v2  ;;  %v39_v10 = vld [vmem:[%s364_s0 + $0x10] sm:$0xff]  ;;  %v40_v11 = vld [vmem:[%s364_s0 + $0x18] sm:$0xff] }
   0x4   :  { %v41_v9 = vpack.c.bf16 %v38_v7, %v37_v6  ;;  %231 = vmatprep.subr.bf16.mxu0 %v47_v4  ;;  %v42_v12 = vpack.c.bf16 %v40_v11, %v39_v10  ;;  %v224_v25 = vld [vmem:[%s365_s2] ss:$0 sm:$0xff]  ;;  %v133_v27 = vld [vmem:[%s366_s3 + $0x10] sm:$0xff]  ;;  %v134_v33 = vld [vmem:[%s366_s3 + $0x18] sm:$0xff] }
   0x5   :  { %232 = vmatpush3.bf16.msra.mxu0 %v47_v4  ;;  %v131_v30 = vld [vmem:[%s366_s3] sm:$0xff]  ;;  %v132_v37 = vld [vmem:[%s366_s3 + $0x8] sm:$0xff] }
   0x6   :  { %235 = vmatprep.mubr.msk.bf16.mxu0 %vm28_vm0, %v41_v9  ;;  %233 = vmatprep.subr.bf16.mxu0 %v48_v8 }
   0x8   :  { %v35_v13 = vld [vmem:[#allocation2 + $0x10] sm:$0xff] }
   0x9   :  { %234 = vmatpush3.bf16.msra.mxu0 %v48_v8  ;;  %v33_v14 = vld [vmem:[#allocation2] sm:$0xff]  ;;  %v34_v19 = vld [vmem:[#allocation2 + $0x8] sm:$0xff] }
   0xa   :  { %v36_v16 = vld [vmem:[#allocation2 + $0x18] sm:$0xff] }
   0xc   :  { %236 = vmatmul.mubr.msk.bf16.vlgmr.msra.gmra.mrb[0].mxu0 %vm28_vm0, %v42_v12 }
  0xdf   :  { %v237_v15 = vpop.f32.mrb[0].mxu0 }
  0xe0   :  { %v107_v17 = vadd.f32 %v237_v15, %v35_v13  ;;  %v90_v18 = vpop.f32.mrb[1].mxu0  ;;  %v225_v15 = vld [vmem:[%s367_s4] ss:$0 sm:$0xff] }
  0xe1   :  { %v105_v20 = vadd.f32 %v90_v18, %v33_v14  ;;  %v238_v21 = vpop.f32.mrb[2].mxu0 }
  0xe2   :  { %111 = vst.msk [vmem:[#allocation2 + $0x10] sm:$0xff] %vm28_vm0, %v107_v17  ;;  %v108_v22 = vadd.f32 %v238_v21, %v36_v16  ;;  %v93_v23 = vpop.f32.mrb[3].mxu0  ;;  %v226_v17 = vld [vmem:[%s368_s5] ss:$0 sm:$0xff] }
  0xe3   :  { %109 = vst.msk [vmem:[#allocation2] sm:$0xff] %vm28_vm0, %v105_v20  ;;  %v106_v24 = vadd.f32 %v93_v23, %v34_v19 }
  0xe4   :  { %112 = vst.msk [vmem:[#allocation2 + $0x18] sm:$0xff] %vm28_vm0, %v108_v22 }
  0xe5   :  { %110 = vst.msk [vmem:[#allocation2 + $0x8] sm:$0xff] %vm28_vm0, %v106_v24 }
  0xe9   :  { %v118_v26 = vld [vmem:[#allocation2 + $0x10] sm:$0xff] }
  0xea   :  { %v129_v28 = vadd.f32 %v224_v25, %v118_v26  ;;  %v116_v29 = vld [vmem:[#allocation2] sm:$0xff] }
  0xeb   :  { %v127_v31 = vadd.f32 %v224_v25, %v116_v29  ;;  %v119_v32 = vld [vmem:[#allocation2 + $0x18] sm:$0xff] }
  0xec   :  { %v137_v34 = vadd.f32 %v133_v27, %v129_v28  ;;  %v130_v35 = vadd.f32 %v224_v25, %v119_v32  ;;  %v117_v36 = vld [vmem:[#allocation2 + $0x8] sm:$0xff] }
  0xed   :  { %v135_v38 = vadd.f32 %v131_v30, %v127_v31  ;;  %v128_v39 = vadd.f32 %v224_v25, %v117_v36 }
  0xee   :  { %v145_v40 = vsel %vm28_vm0, %v137_v34, 0.0  ;;  %v138_v41 = vadd.f32 %v134_v33, %v130_v35 }
  0xef   :  { %146 = vadd.xlane.f32.xlu1 %v145_v40  ;;  %v139_v42 = vsel %vm28_vm0, %v135_v38, 0.0  ;;  %v136_v43 = vadd.f32 %v132_v37, %v128_v39 }
  0xf0   :  { %140 = vadd.xlane.f32.xlu0 %v139_v42  ;;  %v148_v44 = vsel %vm28_vm0, %v138_v41, 0.0 }
  0xf1   :  { %v142_v45 = vsel %vm28_vm0, %v136_v43, 0.0 }
  0xf3   :  { %149 = vadd.xlane.f32.xlu1 %v148_v44 }
  0xf4   :  { %143 = vadd.xlane.f32.xlu0 %v142_v45 }
 0x17c   :  { %v147_v46 = vpop.xlane.xlu1 %146 }
 0x17d   :  { %v154_v47 = vmul.f32 0.03125, %v147_v46  ;;  %v141_v48 = vpop.xlane.xlu0 %140 }
 0x17e   :  { %v152_v49 = vmul.f32 0.03125, %v141_v48 }
 0x17f   :  { %v158_v50 = vsub.f32 %v137_v34, %v154_v47 }
 0x180   :  { %v156_v51 = vsub.f32 %v135_v38, %v152_v49  ;;  %v150_v52 = vpop.xlane.xlu1 %149 }
 0x181   :  { %v155_v53 = vmul.f32 0.03125, %v150_v52  ;;  %v144_v54 = vpop.xlane.xlu0 %143  ;;  %v162_v60 = vmul.f32 %v158_v50, %v158_v50 }
 0x182   :  { %v153_v55 = vmul.f32 0.03125, %v144_v54  ;;  %v160_v56 = vmul.f32 %v156_v51, %v156_v51 }
 0x183   :  { %v159_v57 = vsub.f32 %v138_v41, %v155_v53  ;;  %v170_v62 = vsel %vm28_vm0, %v162_v60, 0.0 }
 0x184   :  { %v157_v58 = vsub.f32 %v136_v43, %v153_v55  ;;  %v164_v59 = vsel %vm28_vm0, %v160_v56, 0.0 }
 0x185   :  { %165 = vadd.xlane.f32.xlu0 %v164_v59  ;;  %v163_v0 = vmul.f32 %v159_v57, %v159_v57 }
 0x186   :  { %v161_v61 = vmul.f32 %v157_v58, %v157_v58 }
 0x187   :  { %v173_v1 = vsel %vm28_vm0, %v163_v0, 0.0 }
 0x188   :  { %v167_v63 = vsel %vm28_vm0, %v161_v61, 0.0 }
 0x189   :  { %171 = vadd.xlane.f32.xlu0 %v170_v62  ;;  %168 = vadd.xlane.f32.xlu1 %v167_v63 }
 0x18d   :  { %174 = vadd.xlane.f32.xlu1 %v173_v1 }
 0x212   :  { %v166_v2 = vpop.xlane.xlu0 %165 }
 0x213   :  { %v176_v3 = vmul.f32 0.03125, %v166_v2 }
 0x215   :  { %v180_v4 = vadd.f32 1e-06, %v176_v3 }
 0x216   :  { %v169_v5 = vpop.xlane.xlu1 %168  ;;  %v172_v6 = vpop.xlane.xlu0 %171 }
 0x217   :  { %240 = vrsqrt.f32 %v180_v4  ;;  %v177_v7 = vmul.f32 0.03125, %v169_v5  ;;  %v178_v8 = vmul.f32 0.03125, %v172_v6 }
 0x219   :  { %v181_v9 = vadd.f32 1e-06, %v177_v7  ;;  %v182_v10 = vadd.f32 1e-06, %v178_v8 }
 0x21a   :  { %v175_v11 = vpop.xlane.xlu1 %174 }
 0x21b   :  { %242 = vrsqrt.f32 %v181_v9  ;;  %v179_v12 = vmul.f32 0.03125, %v175_v11 }
 0x21c   :  { %244 = vrsqrt.f32 %v182_v10 }
 0x21d   :  { %v183_v13 = vadd.f32 1e-06, %v179_v12 }
 0x21f   :  { %246 = vrsqrt.f32 %v183_v13 }
 0x221   :  { %v241_v14 = vpop.eup %240 }
 0x222   :  { %v188_v16 = vmul.f32 %v241_v14, %v156_v51 }
 0x224   :  { %v199_v18 = vmul.f32 %v225_v15, %v188_v16 }
 0x225   :  { %v243_v19 = vpop.eup %242 }
 0x226   :  { %v245_v20 = vpop.eup %244  ;;  %v210_v21 = vadd.f32 %v226_v17, %v199_v18  ;;  %v189_v22 = vmul.f32 %v243_v19, %v157_v58 }
 0x227   :  { %v190_v23 = vmul.f32 %v245_v20, %v158_v50 }
 0x228   :  { %214 = vst.msk [vmem:[%s369_s6] sm:$0xff] %vm28_vm0, %v210_v21  ;;  %v200_v24 = vmul.f32 %v225_v15, %v189_v22 }
 0x229   :  { %v247_v25 = vpop.eup %246  ;;  %v201_v26 = vmul.f32 %v225_v15, %v190_v23 }
 0x22a   :  { %v211_v27 = vadd.f32 %v226_v17, %v200_v24  ;;  %v191_v28 = vmul.f32 %v247_v25, %v159_v57 }
 0x22b   :  { %v212_v29 = vadd.f32 %v226_v17, %v201_v26 }
 0x22c   :  { %215 = vst.msk [vmem:[%s369_s6 + $0x8] sm:$0xff] %vm28_vm0, %v211_v27  ;;  %v202_v30 = vmul.f32 %v225_v15, %v191_v28 }
 0x22d   :  { %216 = vst.msk [vmem:[%s369_s6 + $0x10] sm:$0xff] %vm28_vm0, %v212_v29 }
 0x22e   :  { %v213_v31 = vadd.f32 %v226_v17, %v202_v30 }
 0x230   :  { %217 = vst.msk [vmem:[%s369_s6 + $0x18] sm:$0xff] %vm28_vm0, %v213_v31 }

// kernel: decoder_forward.19
= control target key start
LH: loop header
LB: loop body
LE: loop exit
PB: predicated region body
PF: predicated region fallthrough
CT: control target
= control target key end

     0   :  { %s1076_s15 = smov 0   ;;  %s1198_s0 = inlined_call_operand.vmem [shape: f32[2,16,32], index: 0, kind: input, shape index: {}]   ;;  %s1199_s1 = inlined_call_operand.vmem [shape: f32[2,16,32], index: 1, kind: input, shape index: {}]   ;;  %s1200_s2 = inlined_call_operand.vmem [shape: f32[2,16,32], index: 2, kind: input, shape index: {}]   ;;  %s1201_s3 = inlined_call_operand.vmem [shape: f32[2,16,16], index: 3, kind: input, shape index: {}]   ;;  %s1202_s4 = inlined_call_operand.vmem [shape: f32[2,16,32], index: 4, kind: output, shape index: {}]  }
   0x1 LB: > { %s893_s16 = sadd.s32 4294967295, %s1041_s15   ;;  %p897_p0 = scmp.ge.s32.totalorder %s1041_s15, 1  ;;  %s1041_s15 = sphi %s1076_s15, %s14_s15  }
   0x2   : > { %p192_p1 = scmp.lt.s32.totalorder %s1041_s15, 3 }
   0x4   : > { %p193_p2 = pnand %p897_p0, %p192_p1 }
   0x5   : > { %p233_p3 = scmp.lt.s32.totalorder (!%p193_p2), %s893_s16, 1  ;;  %v1043_v0 = vmov (!%p193_p2), 0.0   ;;  %vm1044_vm0 = vmmov (!%p193_p2), 0   ;;  %vm269_vm1 = vcmask (!%p193_p2), 64512   ;;  %vm321_vm2 = vcmask (!%p193_p2), 130048   ;;  %s1045_s27 = smov (!%p193_p2), 120  }
   0x6   : > { %196 = sbr.rel (%p193_p2) target bundleno = 1499 (0x5db), region = 36  ;;  %939 = vmatprep.subr.bf16.mxu0 (!%p193_p2), %v1043_v0  ;;  %941 = vmatprep.mubr.msk.bf16.mxu0 (!%p193_p2), %vm1044_vm0, %v1043_v0  ;;  %s1046_s28 = smov (!%p193_p2), 104   ;;  %vm796_vm3 = vcmask (!%p193_p2), 195584   ;;  %vm799_vm4 = vcmask (!%p193_p2), 261120  }
   0x7   : > { %945 = vmatprep.subr.bf16.mxu1 (!%p193_p2), %v1043_v0  ;;  %947 = vmatprep.mubr.msk.bf16.mxu1 (!%p193_p2), %vm1044_vm0, %v1043_v0  ;;  %s1047_s6 = smov (!%p193_p2), 112   ;;  %s1048_s7 = smov (!%p193_p2), 8  }
   0x8   : > { %s1049_s8 = smov (!%p193_p2), 16   ;;  %s1050_s9 = smov (!%p193_p2), 24  }
   0xd   : > { %s1204_s16 = smov (!%p233_p3, %s893_s16), 1 }
   0xe   : > { %s1090_s17 = sshll.u32 %s1204_s16, 4 }
   0xf   : > { %s242_s20 = scalar_lea.vmem %s1199_s1, %s1090_s17  ;;  %s237_s23 = scalar_lea.vmem %s1198_s0, %s1090_s17 }
  0x10   : > { %v261_v1 = vld [vmem:[%s242_s20] sm:$0xff]  ;;  %v262_v2 = vld [vmem:[%s242_s20 + $0x8] sm:$0xff]  ;;  %s252_s26 = scalar_lea.vmem %s1201_s3, %s1090_s17  ;;  %s247_s5 = scalar_lea.vmem %s1200_s2, %s1090_s17 }
  0x11   : > { %v268_v3 = vpack.c.bf16 %v262_v2, %v261_v1  ;;  %v259_v5 = vld [vmem:[%s237_s23] sm:$0xff]  ;;  %v260_v6 = vld [vmem:[%s237_s23 + $0x8] sm:$0xff]  ;;  %s257_s12 = scalar_lea.vmem %s1202_s4, %s1090_s17 }
  0x12   : > { %v267_v7 = vpack.c.bf16 %v260_v6, %v259_v5  ;;  %v1109_v9 = vld [vmem:[%s252_s26] sm:$0xff]  ;;  %v1111_v13 = vld [vmem:[%s252_s26 + $0x8] sm:$0xff] }
  0x13   : > { %v274_v4 = vsel %vm269_vm1, %v268_v3, 0  ;;  %v263_v30 = vld [vmem:[%s247_s5] sm:$0xff]  ;;  %v264_v31 = vld [vmem:[%s247_s5 + $0x8] sm:$0xff] }
  0x14   : > { %940 = vmatpush3.bf16.xpose.msra.mxu0 %v274_v4  ;;  %v1125_v32 = vpack.c.bf16 %v264_v31, %v263_v30 }
  0x15   : > { %957 = vmatprep.subr.bf16.mxu0 %v1043_v0 }
  0x16   : > { %946 = vmatpush3.bf16.msra.mxu1 %v1125_v32 }
  0x17   : > { %951 = vmatprep.subr.bf16.mxu1 %v1043_v0 }
  0x1b   : > { %942 = vmatmul.mubr.msk.bf16.vlgmr.msra.gmra.mrb[0].mxu0 %vm269_vm1, %v267_v7 }
  0x1c   : > { %959 = vmatprep.mubr.msk.bf16.mxu0 %vm1044_vm0, %v1043_v0 }
  0xee   : > { %v310_v8 = vpop.f32.mrb[0].mxu0 }
  0xef   : > { %v317_v10 = vmul.f32 5.656854, %v310_v8  ;;  %v943_v11 = vpop.f32.mrb[1].mxu0 }
  0xf0   : > { %v313_v12 = vpop.f32.mrb[2].mxu0 }
  0xf1   : > { %v318_v14 = vmul.f32 5.656854, %v313_v12  ;;  %v944_v15 = vpop.f32.mrb[3].mxu0  ;;  %v319_v16 = vadd.f32 %v317_v10, %v1109_v9 }
  0xf3   : > { %v322_v17 = vsel %vm321_vm2, %v319_v16, -inf  ;;  %v320_v18 = vadd.f32 %v318_v14, %v1111_v13 }
  0xf4   : > { %323 = vmax.xlane.f32.xlu0 %v322_v17 }
  0xf5   : > { %v325_v19 = vsel %vm321_vm2, %v320_v18, -inf }
  0xf8   : > { %326 = vmax.xlane.f32.xlu0 %v325_v19 }
 0x10e   : > { %394 = vrot.lane.b32.xlu0 %v268_v3, %s1045_s27 }
 0x112   : > { %645 = vrot.lane.b32.xlu0 %v268_v3, %s1046_s28 }
 0x181   : > { %v324_v20 = vpop.xlane.xlu0 %323 }
 0x182   : > { %v328_v21 = vsub.f32 %v319_v16, %v324_v20 }
 0x184   : > { %v330_v22 = vmul.f32 1.442695, %v328_v21 }
 0x185   : > { %v327_v23 = vpop.xlane.xlu0 %326 }
 0x186   : > { %1003 = vpow2.f32 %v330_v22  ;;  %v329_v24 = vsub.f32 %v320_v18, %v327_v23 }
 0x188   : > { %v332_v25 = vmul.f32 1.442695, %v329_v24 }
 0x189   : > { %v395_v37 = vpop.permute.xlu0 %394 }
 0x18a   : > { %1005 = vpow2.f32 %v332_v25  ;;  %v400_v41 = vsel %vm269_vm1, %v395_v37, 0 }
 0x18d   : > { %v646_v45 = vpop.permute.xlu0 %645 }
 0x18e   : > { %v651_v47 = vsel %vm269_vm1, %v646_v45, 0 }
 0x190   : > { %v1004_v26 = vpop.eup %1003 }
 0x191   : > { %v334_v27 = vsel %vm321_vm2, %v1004_v26, 0.0 }
 0x192   : > { %335 = vadd.xlane.f32.xlu1 %v334_v27 }
 0x194   : > { %v1006_v28 = vpop.eup %1005 }
 0x195   : > { %v337_v29 = vsel %vm321_vm2, %v1006_v28, 0.0 }
 0x196   : > { %338 = vadd.xlane.f32.xlu1 %v337_v29 }
 0x1a7   : > { %391 = vrot.lane.b32.xlu1 %v267_v7, %s1045_s27 }
 0x1ab   : > { %520 = vrot.lane.b32.xlu1 %v268_v3, %s1047_s6 }
 0x1af   : > { %518 = vrot.lane.b32.xlu1 %v267_v7, %s1047_s6 }
 0x1b3   : > { %643 = vrot.lane.b32.xlu1 %v267_v7, %s1046_s28 }
 0x21f   : > { %v336_v33 = vpop.xlane.xlu1 %335 }
 0x220   : > { %1007 = vrcp.f32 %v336_v33 }
 0x223   : > { %v339_v34 = vpop.xlane.xlu1 %338 }
 0x224   : > { %1009 = vrcp.f32 %v339_v34 }
 0x227   : > { %v392_v40 = vpop.permute.xlu1 %391 }
 0x22a   : > { %v1008_v35 = vpop.eup %1007 }
 0x22b   : > { %v342_v38 = vmul.f32 %v1008_v35, %v1004_v26  ;;  %v521_v43 = vpop.permute.xlu1 %520 }
 0x22c   : > { %v526_v44 = vsel %vm269_vm1, %v521_v43, 0 }
 0x22e   : > { %v1010_v36 = vpop.eup %1009 }
 0x22f   : > { %v343_v39 = vmul.f32 %v1010_v36, %v1006_v28  ;;  %v519_v46 = vpop.permute.xlu1 %518 }
 0x231   : > { %v344_v42 = vpack.c.bf16 %v343_v39, %v342_v38 }
 0x233   : > { %948 = vmatmul.mubr.msk.bf16.vlgmr.msra.gmra.mrb[0].mxu1 %vm321_vm2, %v344_v42  ;;  %v644_v48 = vpop.permute.xlu1 %643 }
 0x234   : > { %952 = vmatpush3.bf16.xpose.msra.mxu1 %v400_v41  ;;  %953 = vmatprep.mubr.msk.bf16.mxu1 %vm1044_vm0, %v1043_v0 }
 0x235   : > { %963 = vmatprep.subr.bf16.mxu1 %v1043_v0 }
 0x23b   : > { %954 = vmatmul.mubr.msk.bf16.vlgmr.msra.gmra.mrb[4].mxu1 %vm269_vm1, %v392_v40 }
 0x23c   : > { %964 = vmatpush3.bf16.xpose.msra.mxu1 %v526_v44  ;;  %965 = vmatprep.mubr.msk.bf16.mxu1 %vm1044_vm0, %v1043_v0 }
 0x23d   : > { %975 = vmatprep.subr.bf16.mxu1 %v1043_v0 }
 0x243   : > { %966 = vmatmul.mubr.msk.bf16.vlgmr.msra.gmra.mrb[8].mxu1 %vm269_vm1, %v519_v46 }
 0x244   : > { %976 = vmatpush3.bf16.xpose.msra.mxu1 %v651_v47  ;;  %977 = vmatprep.mubr.msk.bf16.mxu1 %vm1044_vm0, %v1043_v0 }
 0x24b   : > { %978 = vmatmul.mubr.msk.bf16.vlgmr.msra.gmra.mrb[12].mxu1 %vm269_vm1, %v644_v48 }
 0x306   : > { %v1148_v49 = vpop.f32.mrb[0].mxu1 }
 0x307   : > { %v949_v50 = vpop.f32.mrb[1].mxu1 }
 0x308   : > { %v1150_v51 = vpop.f32.mrb[2].mxu1 }
 0x309   : > { %v950_v52 = vpop.f32.mrb[3].mxu1 }
 0x30e   : > { %v436_v53 = vpop.f32.mrb[4].mxu1 }
 0x30f   : > { %v443_v54 = vmul.f32 5.656854, %v436_v53  ;;  %v955_v55 = vpop.f32.mrb[5].mxu1 }
 0x310   : > { %v439_v56 = vpop.f32.mrb[6].mxu1 }
 0x311   : > { %v444_v57 = vmul.f32 5.656854, %v439_v56  ;;  %v956_v58 = vpop.f32.mrb[7].mxu1  ;;  %v445_v59 = vadd.f32 %v443_v54, %v1109_v9 }
 0x313   : > { %v447_v60 = vsel %vm321_vm2, %v445_v59, -inf  ;;  %v446_v61 = vadd.f32 %v444_v57, %v1111_v13 }
 0x314   : > { %448 = vmax.xlane.f32.xlu0 %v447_v60 }
 0x315   : > { %v450_v62 = vsel %vm321_vm2, %v446_v61, -inf }
 0x316   : > { %451 = vmax.xlane.f32.xlu1 %v450_v62  ;;  %v562_v63 = vpop.f32.mrb[8].mxu1 }
 0x317   : > { %v569_v1 = vmul.f32 5.656854, %v562_v63  ;;  %v967_v2 = vpop.f32.mrb[9].mxu1 }
 0x318   : > { %v565_v3 = vpop.f32.mrb[10].mxu1 }
 0x319   : > { %v570_v4 = vmul.f32 5.656854, %v565_v3  ;;  %v968_v5 = vpop.f32.mrb[11].mxu1  ;;  %v571_v6 = vadd.f32 %v569_v1, %v1109_v9 }
 0x31b   : > { %v573_v7 = vsel %vm321_vm2, %v571_v6, -inf  ;;  %v572_v8 = vadd.f32 %v570_v4, %v1111_v13 }
 0x31c   : > { %574 = vmax.xlane.f32.xlu0 %v573_v7 }
 0x31d   : > { %v576_v14 = vsel %vm321_vm2, %v572_v8, -inf }
 0x31e   : > { %v687_v10 = vpop.f32.mrb[12].mxu1 }
 0x31f   : > { %v694_v11 = vmul.f32 5.656854, %v687_v10  ;;  %v979_v12 = vpop.f32.mrb[13].mxu1 }
 0x320   : > { %577 = vmax.xlane.f32.xlu0 %v576_v14  ;;  %v690_v15 = vpop.f32.mrb[14].mxu1 }
 0x321   : > { %v695_v16 = vmul.f32 5.656854, %v690_v15  ;;  %v696_v17 = vadd.f32 %v694_v11, %v1109_v9  ;;  %v980_v18 = vpop.f32.mrb[15].mxu1 }
 0x323   : > { %v698_v19 = vsel %vm321_vm2, %v696_v17, -inf  ;;  %v697_v20 = vadd.f32 %v695_v16, %v1111_v13 }
 0x324   : > { %699 = vmax.xlane.f32.xlu0 %v698_v19 }
 0x325   : > { %v701_v21 = vsel %vm321_vm2, %v697_v20, -inf }
 0x326   : > { %702 = vmax.xlane.f32.xlu1 %v701_v21 }
 0x3a1   : > { %v449_v22 = vpop.xlane.xlu0 %448 }
 0x3a2   : > { %v453_v23 = vsub.f32 %v445_v59, %v449_v22 }
 0x3a3   : > { %v452_v24 = vpop.xlane.xlu1 %451 }
 0x3a4   : > { %v455_v25 = vmul.f32 1.442695, %v453_v23  ;;  %v454_v26 = vsub.f32 %v446_v61, %v452_v24 }
 0x3a6   : > { %1011 = vpow2.f32 %v455_v25  ;;  %v457_v27 = vmul.f32 1.442695, %v454_v26 }
 0x3a8   : > { %1013 = vpow2.f32 %v457_v27 }
 0x3a9   : > { %v575_v28 = vpop.xlane.xlu0 %574 }
 0x3aa   : > { %v579_v29 = vsub.f32 %v571_v6, %v575_v28 }
 0x3ac   : > { %v581_v9 = vmul.f32 1.442695, %v579_v29 }
 0x3ad   : > { %v578_v30 = vpop.xlane.xlu0 %577 }
 0x3ae   : > { %1015 = vpow2.f32 %v581_v9  ;;  %v580_v31 = vsub.f32 %v572_v8, %v578_v30 }
 0x3b0   : > { %v1012_v33 = vpop.eup %1011  ;;  %v583_v13 = vmul.f32 1.442695, %v580_v31 }
 0x3b1   : > { %v700_v34 = vpop.xlane.xlu0 %699  ;;  %v459_v35 = vsel %vm321_vm2, %v1012_v33, 0.0 }
 0x3b2   : > { %v1014_v36 = vpop.eup %1013  ;;  %1017 = vpow2.f32 %v583_v13  ;;  %v704_v37 = vsub.f32 %v696_v17, %v700_v34  ;;  %460 = vadd.xlane.f32.xlu0 %v459_v35 }
 0x3b3   : > { %v462_v38 = vsel %vm321_vm2, %v1014_v36, 0.0  ;;  %v703_v46 = vpop.xlane.xlu1 %702 }
 0x3b4   : > { %v706_v39 = vmul.f32 1.442695, %v704_v37  ;;  %463 = vadd.xlane.f32.xlu1 %v462_v38  ;;  %v705_v47 = vsub.f32 %v697_v20, %v703_v46 }
 0x3b6   : > { %1019 = vpow2.f32 %v706_v39  ;;  %v708_v48 = vmul.f32 1.442695, %v705_v47 }
 0x3b8   : > { %v1016_v40 = vpop.eup %1015  ;;  %1021 = vpow2.f32 %v708_v48 }
 0x3b9   : > { %v585_v41 = vsel %vm321_vm2, %v1016_v40, 0.0 }
 0x3ba   : > { %586 = vadd.xlane.f32.xlu0 %v585_v41 }
 0x3bc   : > { %v1018_v42 = vpop.eup %1017 }
 0x3bd   : > { %v588_v43 = vsel %vm321_vm2, %v1018_v42, 0.0 }
 0x3be   : > { %589 = vadd.xlane.f32.xlu1 %v588_v43 }
 0x3c0   : > { %v1020_v44 = vpop.eup %1019 }
 0x3c1   : > { %v710_v45 = vsel %vm321_vm2, %v1020_v44, 0.0 }
 0x3c2   : > { %711 = vadd.xlane.f32.xlu0 %v710_v45  ;;  %v1022_v50 = vpop.eup %1021 }
 0x3c3   : > { %v713_v52 = vsel %vm321_vm2, %v1022_v50, 0.0 }
 0x3cf   : > { %596 = vrot.lane.b32.xlu1 %v1125_v32, %s1047_s6 }
 0x3d8   : > { %471 = vrot.lane.b32.xlu0 %v1125_v32, %s1045_s27 }
 0x3f3   : > { %714 = vadd.xlane.f32.xlu1 %v713_v52 }
 0x404   : > { %721 = vrot.lane.b32.xlu1 %v1125_v32, %s1046_s28 }
 0x43f   : > { %v461_v54 = vpop.xlane.xlu0 %460 }
 0x441   : > { %v464_v53 = vpop.xlane.xlu1 %463 }
 0x442   : > { %1023 = vrcp.f32 %v464_v53 }
 0x443   : > { %1025 = vrcp.f32 %v461_v54 }
 0x447   : > { %v587_v55 = vpop.xlane.xlu0 %586 }
 0x44b   : > { %v590_v56 = vpop.xlane.xlu1 %589 }
 0x44c   : > { %1027 = vrcp.f32 %v590_v56  ;;  %v1024_v57 = vpop.eup %1023 }
 0x44d   : > { %1029 = vrcp.f32 %v587_v55  ;;  %v1026_v59 = vpop.eup %1025  ;;  %v468_v60 = vmul.f32 %v1024_v57, %v1014_v36 }
 0x44e   : > { %v467_v61 = vmul.f32 %v1026_v59, %v1012_v33 }
 0x44f   : > { %v712_v58 = vpop.xlane.xlu0 %711  ;;  %v597_v32 = vpop.permute.xlu1 %596 }
 0x450   : > { %v469_v63 = vpack.c.bf16 %v468_v60, %v467_v61  ;;  %1031 = vrcp.f32 %v712_v58 }
 0x453   : > { %v472_v62 = vpop.permute.xlu0 %471 }
 0x454   : > { %958 = vmatpush3.bf16.msra.mxu0 %v472_v62 }
 0x455   : > { %969 = vmatprep.subr.bf16.mxu0 %v1043_v0 }
 0x456   : > { %v1028_v1 = vpop.eup %1027 }
 0x457   : > { %960 = vmatmul.mubr.msk.bf16.vlgmr.msra.gmra.mrb[4].mxu0 %vm321_vm2, %v469_v63  ;;  %v1030_v2 = vpop.eup %1029  ;;  %v594_v3 = vmul.f32 %v1028_v1, %v1018_v42 }
 0x458   : > { %970 = vmatpush3.bf16.msra.mxu0 %v597_v32  ;;  %971 = vmatprep.mubr.msk.bf16.mxu0 %vm1044_vm0, %v1043_v0  ;;  %v593_v4 = vmul.f32 %v1030_v2, %v1016_v40 }
 0x459   : > { %981 = vmatprep.subr.bf16.mxu0 %v1043_v0 }
 0x45a   : > { %v595_v5 = vpack.c.bf16 %v594_v3, %v593_v4  ;;  %v1032_v8 = vpop.eup %1031 }
 0x45b   : > { %v718_v11 = vmul.f32 %v1032_v8, %v1020_v44 }
 0x45f   : > { %972 = vmatmul.mubr.msk.bf16.vlgmr.msra.gmra.mrb[8].mxu0 %vm321_vm2, %v595_v5 }
 0x460   : > { %983 = vmatprep.mubr.msk.bf16.mxu0 %vm1044_vm0, %v1043_v0 }
 0x480   : > { %v715_v6 = vpop.xlane.xlu1 %714 }
 0x481   : > { %1033 = vrcp.f32 %v715_v6 }
 0x484   : > { %v722_v7 = vpop.permute.xlu1 %721 }
 0x485   : > { %982 = vmatpush3.bf16.msra.mxu0 %v722_v7 }
 0x48b   : > { %v1034_v10 = vpop.eup %1033 }
 0x48c   : > { %v719_v12 = vmul.f32 %v1034_v10, %v1022_v50 }
 0x48e   : > { %v720_v14 = vpack.c.bf16 %v719_v12, %v718_v11 }
 0x490   : > { %984 = vmatmul.mubr.msk.bf16.vlgmr.msra.gmra.mrb[12].mxu0 %vm321_vm2, %v720_v14 }
 0x52a   : > { %v511_v15 = vpop.f32.mrb[4].mxu0 }
 0x52b   : > { %770 = vrot.lane.b32.xlu1 %v511_v15, %s1048_s7  ;;  %v961_v16 = vpop.f32.mrb[5].mxu0 }
 0x52c   : > { %v514_v17 = vpop.f32.mrb[6].mxu0 }
 0x52d   : > { %772 = vrot.lane.b32.xlu0 %v514_v17, %s1048_s7  ;;  %v962_v18 = vpop.f32.mrb[7].mxu0 }
 0x532   : > { %v636_v0 = vpop.f32.mrb[8].mxu0 }
 0x533   : > { %778 = vrot.lane.b32.xlu1 %v636_v0, %s1049_s8  ;;  %v973_v19 = vpop.f32.mrb[9].mxu0 }
 0x534   : > { %v639_v20 = vpop.f32.mrb[10].mxu0 }
 0x535   : > { %780 = vrot.lane.b32.xlu0 %v639_v20, %s1049_s8  ;;  %v974_v21 = vpop.f32.mrb[11].mxu0 }
 0x563   : > { %v761_v22 = vpop.f32.mrb[12].mxu0 }
 0x564   : > { %786 = vrot.lane.b32.xlu1 %v761_v22, %s1050_s9  ;;  %v985_v23 = vpop.f32.mrb[13].mxu0 }
 0x565   : > { %v764_v24 = vpop.f32.mrb[14].mxu0 }
 0x566   : > { %788 = vrot.lane.b32.xlu0 %v764_v24, %s1050_s9  ;;  %v986_v25 = vpop.f32.mrb[15].mxu0 }
 0x59d   : > { %v771_v26 = vpop.permute.xlu1 %770 }
 0x59e   : > { %v792_v9 = vsel %vm269_vm1, %v1148_v49, %v771_v26 }
 0x59f   : > { %v773_v27 = vpop.permute.xlu0 %772 }
 0x5a0   : > { %v793_v33 = vsel %vm269_vm1, %v1150_v51, %v773_v27 }
 0x5a5   : > { %v779_v28 = vpop.permute.xlu1 %778 }
 0x5a6   : > { %v794_v30 = vsel %vm321_vm2, %v792_v9, %v779_v28 }
 0x5a7   : > { %v781_v29 = vpop.permute.xlu0 %780 }
 0x5a8   : > { %v795_v34 = vsel %vm321_vm2, %v793_v33, %v781_v29 }
 0x5d6   : > { %v787_v31 = vpop.permute.xlu1 %786 }
 0x5d7   : > { %v797_v13 = vsel %vm796_vm3, %v794_v30, %v787_v31 }
 0x5d8   : > { %800 = vst.msk [vmem:[%s257_s12] sm:$0xff] %vm799_vm4, %v797_v13  ;;  %v789_v35 = vpop.permute.xlu0 %788 }
 0x5d9   : > { %v798_v36 = vsel %vm796_vm3, %v795_v34, %v789_v35 }
 0x5da   : > { %801 = vst.msk [vmem:[%s257_s12 + $0x8] sm:$0xff] %vm799_vm4, %v798_v36 }
 0x5db PF: > { %s14_s15 = sadd.s32 1, %s1041_s15  }
 0x5dc   : > { %p11_p4 = scmp.ge.s32.totalorder %s14_s15, 4  }
 0x5de   :  { %13 = sbr.rel (!%p11_p4) target bundleno = 1 (0x1), region = 75 }

// kernel: decoder_forward.21
= control target key start
LH: loop header
LB: loop body
LE: loop exit
PB: predicated region body
PF: predicated region fallthrough
CT: control target
= control target key end

     0   :  { %vm16_vm0 = vcmask 261120   ;;  %v131_v3 = vmov 0.0   ;;  %s197_s1 = inlined_call_operand.vmem [shape: f32[32,32], index: 1, kind: input, shape index: {}]   ;;  %s198_s0 = inlined_call_operand.vmem [shape: f32[32,32], index: 0, kind: input, shape index: {}]   ;;  %s199_s2 = inlined_call_operand.vmem [shape: f32[32,32], index: 2, kind: output, shape index: {}]  }
   0x1   :  { %v31_v0 = vld [vmem:[%s197_s1] sm:$0xff]  ;;  %v32_v1 = vld [vmem:[%s197_s1 + $0x8] sm:$0xff]  ;;  %v33_v2 = vld [vmem:[%s197_s1 + $0x10] sm:$0xff]  ;;  %19 = vst.msk [vmem:[#allocation2 + $0x10] sm:$0xff] %vm16_vm0, %v131_v3 }
   0x2   :  { %17 = vst.msk [vmem:[#allocation2] sm:$0xff] %vm16_vm0, %v131_v3  ;;  %18 = vst.msk [vmem:[#allocation2 + $0x8] sm:$0xff] %vm16_vm0, %v131_v3  ;;  %v35_v4 = vpack.c.bf16 %v32_v1, %v31_v0  ;;  %v34_v5 = vld [vmem:[%s197_s1 + $0x18] sm:$0xff]  ;;  %v25_v6 = vld [vmem:[%s198_s0] sm:$0xff] }
   0x3   :  { %20 = vst.msk [vmem:[#allocation2 + $0x18] sm:$0xff] %vm16_vm0, %v131_v3  ;;  %v26_v7 = vld [vmem:[%s198_s0 + $0x8] sm:$0xff]  ;;  %v36_v8 = vpack.c.bf16 %v34_v5, %v33_v2  ;;  %v27_v10 = vld [vmem:[%s198_s0 + $0x10] sm:$0xff]  ;;  %v28_v11 = vld [vmem:[%s198_s0 + $0x18] sm:$0xff] }
   0x4   :  { %v29_v9 = vpack.c.bf16 %v26_v7, %v25_v6  ;;  %122 = vmatprep.subr.bf16.mxu0 %v35_v4  ;;  %v30_v12 = vpack.c.bf16 %v28_v11, %v27_v10 }
   0x5   :  { %123 = vmatpush3.bf16.msra.mxu0 %v35_v4 }
   0x6   :  { %126 = vmatprep.mubr.msk.bf16.mxu0 %vm16_vm0, %v29_v9  ;;  %124 = vmatprep.subr.bf16.mxu0 %v36_v8 }
   0x8   :  { %v23_v13 = vld [vmem:[#allocation2 + $0x10] sm:$0xff] }
   0x9   :  { %125 = vmatpush3.bf16.msra.mxu0 %v36_v8  ;;  %v21_v14 = vld [vmem:[#allocation2] sm:$0xff]  ;;  %v22_v19 = vld [vmem:[#allocation2 + $0x8] sm:$0xff] }
   0xa   :  { %v24_v16 = vld [vmem:[#allocation2 + $0x18] sm:$0xff] }
   0xc   :  { %127 = vmatmul.mubr.msk.bf16.vlgmr.msra.gmra.mrb[0].mxu0 %vm16_vm0, %v30_v12 }
  0xdf   :  { %v128_v15 = vpop.f32.mrb[0].mxu0 }
  0xe0   :  { %v95_v17 = vadd.f32 %v128_v15, %v23_v13  ;;  %v78_v18 = vpop.f32.mrb[1].mxu0 }
  0xe1   :  { %v93_v20 = vadd.f32 %v78_v18, %v21_v14  ;;  %v129_v21 = vpop.f32.mrb[2].mxu0 }
  0xe2   :  { %99 = vst.msk [vmem:[#allocation2 + $0x10] sm:$0xff] %vm16_vm0, %v95_v17  ;;  %v96_v22 = vadd.f32 %v129_v21, %v24_v16  ;;  %v81_v23 = vpop.f32.mrb[3].mxu0 }
  0xe3   :  { %97 = vst.msk [vmem:[#allocation2] sm:$0xff] %vm16_vm0, %v93_v20  ;;  %v94_v24 = vadd.f32 %v81_v23, %v22_v19 }
  0xe4   :  { %100 = vst.msk [vmem:[#allocation2 + $0x18] sm:$0xff] %vm16_vm0, %v96_v22 }
  0xe5   :  { %98 = vst.msk [vmem:[#allocation2 + $0x8] sm:$0xff] %vm16_vm0, %v94_v24 }
  0xe9   :  { %v106_v25 = vld [vmem:[#allocation2 + $0x10] sm:$0xff] }
  0xea   :  { %110 = vst.msk [vmem:[%s199_s2 + $0x10] sm:$0xff] %vm16_vm0, %v106_v25  ;;  %v104_v26 = vld [vmem:[#allocation2] sm:$0xff] }
  0xeb   :  { %108 = vst.msk [vmem:[%s199_s2] sm:$0xff] %vm16_vm0, %v104_v26  ;;  %v107_v27 = vld [vmem:[#allocation2 + $0x18] sm:$0xff] }
  0xec   :  { %111 = vst.msk [vmem:[%s199_s2 + $0x18] sm:$0xff] %vm16_vm0, %v107_v27  ;;  %v105_v28 = vld [vmem:[#allocation2 + $0x8] sm:$0xff] }
  0xed   :  { %109 = vst.msk [vmem:[%s199_s2 + $0x8] sm:$0xff] %vm16_vm0, %v105_v28 }

// kernel: decoder_forward.22
= control target key start
LH: loop header
LB: loop body
LE: loop exit
PB: predicated region body
PF: predicated region fallthrough
CT: control target
= control target key end

     0   :  { %vm16_vm0 = vcmask 523264   ;;  %v132_v3 = vmov 0.0   ;;  %vm37_vm1 = vcmask 261120   ;;  %s196_s1 = inlined_call_operand.vmem [shape: f32[32,64], index: 1, kind: input, shape index: {}]   ;;  %s197_s0 = inlined_call_operand.vmem [shape: f32[32,32], index: 0, kind: input, shape index: {}]   ;;  %s198_s2 = inlined_call_operand.vmem [shape: f32[32,64], index: 2, kind: output, shape index: {}]  }
   0x1   :  { %v31_v0 = vld [vmem:[%s196_s1] sm:$0xff]  ;;  %v32_v1 = vld [vmem:[%s196_s1 + $0x8] sm:$0xff]  ;;  %v33_v2 = vld [vmem:[%s196_s1 + $0x10] sm:$0xff]  ;;  %19 = vst.msk [vmem:[#allocation2 + $0x10] sm:$0xff] %vm16_vm0, %v132_v3 }
   0x2   :  { %17 = vst.msk [vmem:[#allocation2] sm:$0xff] %vm16_vm0, %v132_v3  ;;  %18 = vst.msk [vmem:[#allocation2 + $0x8] sm:$0xff] %vm16_vm0, %v132_v3  ;;  %v35_v4 = vpack.c.bf16 %v32_v1, %v31_v0  ;;  %v34_v5 = vld [vmem:[%s196_s1 + $0x18] sm:$0xff]  ;;  %v25_v6 = vld [vmem:[%s197_s0] sm:$0xff] }
   0x3   :  { %20 = vst.msk [vmem:[#allocation2 + $0x18] sm:$0xff] %vm16_vm0, %v132_v3  ;;  %v26_v7 = vld [vmem:[%s197_s0 + $0x8] sm:$0xff]  ;;  %v36_v8 = vpack.c.bf16 %v34_v5, %v33_v2  ;;  %v27_v10 = vld [vmem:[%s197_s0 + $0x10] sm:$0xff]  ;;  %v28_v11 = vld [vmem:[%s197_s0 + $0x18] sm:$0xff] }
   0x4   :  { %v29_v9 = vpack.c.bf16 %v26_v7, %v25_v6  ;;  %123 = vmatprep.subr.bf16.mxu0 %v35_v4  ;;  %v30_v12 = vpack.c.bf16 %v28_v11, %v27_v10 }
   0x5   :  { %124 = vmatpush3.bf16.msra.mxu0 %v35_v4 }
   0x6   :  { %127 = vmatprep.mubr.msk.bf16.mxu0 %vm37_vm1, %v29_v9  ;;  %125 = vmatprep.subr.bf16.mxu0 %v36_v8 }
   0x8   :  { %v23_v13 = vld [vmem:[#allocation2 + $0x10] sm:$0xff] }
   0x9   :  { %126 = vmatpush3.bf16.msra.mxu0 %v36_v8  ;;  %v21_v14 = vld [vmem:[#allocation2] sm:$0xff]  ;;  %v22_v19 = vld [vmem:[#allocation2 + $0x8] sm:$0xff] }
   0xa   :  { %v24_v16 = vld [vmem:[#allocation2 + $0x18] sm:$0xff] }
   0xc   :  { %128 = vmatmul.mubr.msk.bf16.vlgmr.msra.gmra.mrb[0].mxu0 %vm37_vm1, %v30_v12 }
  0xdf   :  { %v129_v15 = vpop.f32.mrb[0].mxu0 }
  0xe0   :  { %v95_v17 = vadd.f32 %v129_v15, %v23_v13  ;;  %v78_v18 = vpop.f32.mrb[1].mxu0 }
  0xe1   :  { %v93_v20 = vadd.f32 %v78_v18, %v21_v14  ;;  %v130_v21 = vpop.f32.mrb[2].mxu0 }
  0xe2   :  { %100 = vst.msk [vmem:[#allocation2 + $0x10] sm:$0xff] %vm16_vm0, %v95_v17  ;;  %v96_v22 = vadd.f32 %v130_v21, %v24_v16  ;;  %v81_v23 = vpop.f32.mrb[3].mxu0 }
  0xe3   :  { %98 = vst.msk [vmem:[#allocation2] sm:$0xff] %vm16_vm0, %v93_v20  ;;  %v94_v24 = vadd.f32 %v81_v23, %v22_v19 }
  0xe4   :  { %101 = vst.msk [vmem:[#allocation2 + $0x18] sm:$0xff] %vm16_vm0, %v96_v22 }
  0xe5   :  { %99 = vst.msk [vmem:[#allocation2 + $0x8] sm:$0xff] %vm16_vm0, %v94_v24 }
  0xe9   :  { %v107_v25 = vld [vmem:[#allocation2 + $0x10] sm:$0xff] }
  0xea   :  { %111 = vst.msk [vmem:[%s198_s2 + $0x10] sm:$0xff] %vm16_vm0, %v107_v25  ;;  %v105_v26 = vld [vmem:[#allocation2] sm:$0xff] }
  0xeb   :  { %109 = vst.msk [vmem:[%s198_s2] sm:$0xff] %vm16_vm0, %v105_v26  ;;  %v108_v27 = vld [vmem:[#allocation2 + $0x18] sm:$0xff] }
  0xec   :  { %112 = vst.msk [vmem:[%s198_s2 + $0x18] sm:$0xff] %vm16_vm0, %v108_v27  ;;  %v106_v28 = vld [vmem:[#allocation2 + $0x8] sm:$0xff] }
  0xed   :  { %110 = vst.msk [vmem:[%s198_s2 + $0x8] sm:$0xff] %vm16_vm0, %v106_v28 }

// kernel: decoder_forward.25
= control target key start
LH: loop header
LB: loop body
LE: loop exit
PB: predicated region body
PF: predicated region fallthrough
CT: control target
= control target key end

     0   :  { %vm19_vm0 = vcmask 261120   ;;  %v146_v3 = vmov 0.0   ;;  %s220_s1 = inlined_call_operand.vmem [shape: f32[32,32], index: 1, kind: input, shape index: {}]   ;;  %s221_s0 = inlined_call_operand.vmem [shape: f32[32,32], index: 0, kind: input, shape index: {}]   ;;  %s222_s2 = inlined_call_operand.vmem [shape: f32[1,32], index: 2, kind: input, shape index: {}]   ;;  %s223_s3 = inlined_call_operand.vmem [shape: f32[32,32], index: 3, kind: output, shape index: {}]  }
   0x1   :  { %v34_v0 = vld [vmem:[%s220_s1] sm:$0xff]  ;;  %v35_v1 = vld [vmem:[%s220_s1 + $0x8] sm:$0xff]  ;;  %v36_v2 = vld [vmem:[%s220_s1 + $0x10] sm:$0xff]  ;;  %22 = vst.msk [vmem:[#allocation2 + $0x10] sm:$0xff] %vm19_vm0, %v146_v3 }
   0x2   :  { %20 = vst.msk [vmem:[#allocation2] sm:$0xff] %vm19_vm0, %v146_v3  ;;  %21 = vst.msk [vmem:[#allocation2 + $0x8] sm:$0xff] %vm19_vm0, %v146_v3  ;;  %v38_v4 = vpack.c.bf16 %v35_v1, %v34_v0  ;;  %v37_v5 = vld [vmem:[%s220_s1 + $0x18] sm:$0xff]  ;;  %v28_v6 = vld [vmem:[%s221_s0] sm:$0xff] }
   0x3   :  { %23 = vst.msk [vmem:[#allocation2 + $0x18] sm:$0xff] %vm19_vm0, %v146_v3  ;;  %v29_v7 = vld [vmem:[%s221_s0 + $0x8] sm:$0xff]  ;;  %v39_v8 = vpack.c.bf16 %v37_v5, %v36_v2  ;;  %v30_v10 = vld [vmem:[%s221_s0 + $0x10] sm:$0xff]  ;;  %v31_v11 = vld [vmem:[%s221_s0 + $0x18] sm:$0xff] }
   0x4   :  { %v32_v9 = vpack.c.bf16 %v29_v7, %v28_v6  ;;  %137 = vmatprep.subr.bf16.mxu0 %v38_v4  ;;  %v33_v12 = vpack.c.bf16 %v31_v11, %v30_v10  ;;  %v132_v25 = vld [vmem:[%s222_s2] ss:$0 sm:$0xff] }
   0x5   :  { %138 = vmatpush3.bf16.msra.mxu0 %v38_v4 }
   0x6   :  { %141 = vmatprep.mubr.msk.bf16.mxu0 %vm19_vm0, %v32_v9  ;;  %139 = vmatprep.subr.bf16.mxu0 %v39_v8 }
   0x8   :  { %v26_v13 = vld [vmem:[#allocation2 + $0x10] sm:$0xff] }
   0x9   :  { %140 = vmatpush3.bf16.msra.mxu0 %v39_v8  ;;  %v24_v14 = vld [vmem:[#allocation2] sm:$0xff]  ;;  %v25_v19 = vld [vmem:[#allocation2 + $0x8] sm:$0xff] }
   0xa   :  { %v27_v16 = vld [vmem:[#allocation2 + $0x18] sm:$0xff] }
   0xc   :  { %142 = vmatmul.mubr.msk.bf16.vlgmr.msra.gmra.mrb[0].mxu0 %vm19_vm0, %v33_v12 }
  0xdf   :  { %v143_v15 = vpop.f32.mrb[0].mxu0 }
  0xe0   :  { %v98_v17 = vadd.f32 %v143_v15, %v26_v13  ;;  %v81_v18 = vpop.f32.mrb[1].mxu0 }
  0xe1   :  { %v96_v20 = vadd.f32 %v81_v18, %v24_v14  ;;  %v144_v21 = vpop.f32.mrb[2].mxu0 }
  0xe2   :  { %102 = vst.msk [vmem:[#allocation2 + $0x10] sm:$0xff] %vm19_vm0, %v98_v17  ;;  %v99_v22 = vadd.f32 %v144_v21, %v27_v16  ;;  %v84_v23 = vpop.f32.mrb[3].mxu0 }
  0xe3   :  { %100 = vst.msk [vmem:[#allocation2] sm:$0xff] %vm19_vm0, %v96_v20  ;;  %v97_v24 = vadd.f32 %v84_v23, %v25_v19 }
  0xe4   :  { %103 = vst.msk [vmem:[#allocation2 + $0x18] sm:$0xff] %vm19_vm0, %v99_v22 }
  0xe5   :  { %101 = vst.msk [vmem:[#allocation2 + $0x8] sm:$0xff] %vm19_vm0, %v97_v24 }
  0xe9   :  { %v109_v26 = vld [vmem:[#allocation2 + $0x10] sm:$0xff] }
  0xea   :  { %v120_v27 = vadd.f32 %v132_v25, %v109_v26  ;;  %v107_v28 = vld [vmem:[#allocation2] sm:$0xff] }
  0xeb   :  { %v118_v29 = vadd.f32 %v132_v25, %v107_v28  ;;  %v110_v30 = vld [vmem:[#allocation2 + $0x18] sm:$0xff] }
  0xec   :  { %124 = vst.msk [vmem:[%s223_s3 + $0x10] sm:$0xff] %vm19_vm0, %v120_v27  ;;  %v121_v31 = vadd.f32 %v132_v25, %v110_v30  ;;  %v108_v32 = vld [vmem:[#allocation2 + $0x8] sm:$0xff] }
  0xed   :  { %122 = vst.msk [vmem:[%s223_s3] sm:$0xff] %vm19_vm0, %v118_v29  ;;  %v119_v33 = vadd.f32 %v132_v25, %v108_v32 }
  0xee   :  { %125 = vst.msk [vmem:[%s223_s3 + $0x18] sm:$0xff] %vm19_vm0, %v121_v31 }
  0xef   :  { %123 = vst.msk [vmem:[%s223_s3 + $0x8] sm:$0xff] %vm19_vm0, %v119_v33 }

// kernel: decoder_forward.33
= control target key start
LH: loop header
LB: loop body
LE: loop exit
PB: predicated region body
PF: predicated region fallthrough
CT: control target
= control target key end

     0   :  { %vm20_vm0 = vcmask 261120   ;;  %v186_v7 = vmov 0.0   ;;  %s263_s0 = inlined_call_operand.vmem [shape: f32[32,32], index: 0, kind: input, shape index: {}]   ;;  %s264_s1 = inlined_call_operand.vmem [shape: f32[32,32], index: 1, kind: input, shape index: {}]   ;;  %s265_s2 = inlined_call_operand.vmem [shape: f32[1,32], index: 2, kind: input, shape index: {}]   ;;  %s266_s3 = inlined_call_operand.hbm [shape: f32[32,32], index: 3, kind: output, shape index: {}]  }
   0x1   :  { %v35_v0 = vld [vmem:[%s264_s1] sm:$0xff]  ;;  %v36_v1 = vld [vmem:[%s264_s1 + $0x8] sm:$0xff]  ;;  %v37_v2 = vld [vmem:[%s264_s1 + $0x10] sm:$0xff]  ;;  %23 = vst.msk [vmem:[#allocation2 + $0x10] sm:$0xff] %vm20_vm0, %v186_v7 }
   0x2   :  { %v39_v3 = vpack.c.bf16 %v36_v1, %v35_v0  ;;  %v38_v4 = vld [vmem:[%s264_s1 + $0x18] sm:$0xff]  ;;  %v29_v5 = vld [vmem:[%s263_s0] sm:$0xff]  ;;  %v30_v6 = vld [vmem:[%s263_s0 + $0x8] sm:$0xff]  ;;  %21 = vst.msk [vmem:[#allocation2] sm:$0xff] %vm20_vm0, %v186_v7 }
   0x3   :  { %22 = vst.msk [vmem:[#allocation2 + $0x8] sm:$0xff] %vm20_vm0, %v186_v7  ;;  %24 = vst.msk [vmem:[#allocation2 + $0x18] sm:$0xff] %vm20_vm0, %v186_v7  ;;  %v40_v8 = vpack.c.bf16 %v38_v4, %v37_v2  ;;  %v33_v9 = vpack.c.bf16 %v30_v6, %v29_v5 }
   0x4   :  { %8 = vsyncpa [#allocation4], 0  ;;  %150 = vmatprep.subr.bf16.mxu0 %v39_v3  ;;  %v31_v10 = vld [vmem:[%s263_s0 + $0x10] sm:$0xff]  ;;  %v32_v11 = vld [vmem:[%s263_s0 + $0x18] sm:$0xff]  ;;  %s187_s28 = smov [#allocation3]  }
   0x5   :  { %151 = vmatpush3.bf16.msra.mxu0 %v39_v3  ;;  %154 = vmatprep.mubr.msk.bf16.mxu0 %vm20_vm0, %v33_v9  ;;  %v34_v12 = vpack.c.bf16 %v32_v11, %v31_v10  ;;  %v145_v25 = vld [vmem:[%s265_s2] ss:$0 sm:$0xff]  ;;  %s132_s29 = sshll.u32 %s187_s28, 4  ;;  %s133_s29 = int_to_ptr.vmem [resolvable:$true] %s132_s29 }
   0x6   :  { %152 = vmatprep.subr.bf16.mxu0 %v40_v8  ;;  %s162_s2 = scalar_lea.vmem %s133_s29, 512  ;;  %p167_p1 = scmp.lt.s32.totalorder %s133_s29, %s133_s29 }
   0x7   :  { %p163_p0 = scmp.ne.s32.totalorder %s133_s29, %s162_s2  ;;  %p168_p2 = scmp.lt.s32.totalorder %s162_s2, %s162_s2 }
   0x8   :  { %v27_v13 = vld [vmem:[#allocation2 + $0x10] sm:$0xff] }
   0x9   :  { %153 = vmatpush3.bf16.msra.mxu0 %v40_v8  ;;  %v25_v14 = vld [vmem:[#allocation2] sm:$0xff]  ;;  %p169_p3 = por %p168_p2, %p167_p1 }
   0xa   :  { %v28_v16 = vld [vmem:[#allocation2 + $0x18] sm:$0xff]  ;;  %v26_v19 = vld [vmem:[#allocation2 + $0x8] sm:$0xff] }
   0xb   :  { %p170_p4 = pnand %p169_p3, %p163_p0 }
   0xc   :  { %155 = vmatmul.mubr.msk.bf16.vlgmr.msra.gmra.mrb[0].mxu0 %vm20_vm0, %v34_v12 }
  0xdf   :  { %v156_v15 = vpop.f32.mrb[0].mxu0 }
  0xe0   :  { %v99_v17 = vadd.f32 %v156_v15, %v27_v13  ;;  %v82_v18 = vpop.f32.mrb[1].mxu0 }
  0xe1   :  { %v97_v20 = vadd.f32 %v82_v18, %v25_v14  ;;  %v157_v21 = vpop.f32.mrb[2].mxu0 }
  0xe2   :  { %103 = vst.msk [vmem:[#allocation2 + $0x10] sm:$0xff] %vm20_vm0, %v99_v17  ;;  %v100_v22 = vadd.f32 %v157_v21, %v28_v16  ;;  %v85_v23 = vpop.f32.mrb[3].mxu0 }
  0xe3   :  { %101 = vst.msk [vmem:[#allocation2] sm:$0xff] %vm20_vm0, %v97_v20  ;;  %v98_v24 = vadd.f32 %v85_v23, %v26_v19 }
  0xe4   :  { %104 = vst.msk [vmem:[#allocation2 + $0x18] sm:$0xff] %vm20_vm0, %v100_v22 }
  0xe5   :  { %102 = vst.msk [vmem:[#allocation2 + $0x8] sm:$0xff] %vm20_vm0, %v98_v24 }
  0xe9   :  { %v110_v26 = vld [vmem:[#allocation2 + $0x10] sm:$0xff] }
  0xea   :  { %v108_v27 = vld [vmem:[#allocation2] sm:$0xff]  ;;  %v121_v28 = vadd.f32 %v145_v25, %v110_v26 }
  0xeb   :  { %v111_v29 = vld [vmem:[#allocation2 + $0x18] sm:$0xff]  ;;  %v119_v30 = vadd.f32 %v145_v25, %v108_v27 }
  0xec   :  { %v109_v31 = vld [vmem:[#allocation2 + $0x8] sm:$0xff]  ;;  %v122_v32 = vadd.f32 %v145_v25, %v111_v29  ;;  %125 = vst.msk [vmem:[#allocation3 + $0x10] sm:$0xff] %vm20_vm0, %v121_v28 }
  0xed   :  { %v120_v33 = vadd.f32 %v145_v25, %v109_v31  ;;  %123 = vst.msk [vmem:[#allocation3] sm:$0xff] %vm20_vm0, %v119_v30 }
  0xee   :  { %126 = vst.msk [vmem:[#allocation3 + $0x18] sm:$0xff] %vm20_vm0, %v122_v32 }
  0xef   :  { %124 = vst.msk [vmem:[#allocation3 + $0x8] sm:$0xff] %vm20_vm0, %v120_v33 }
  0xf0   :  { %173 = shalt.err (!%p170_p4)
}
  0xf1   :  { %s174_s5 = scalar_lea.hbm %s266_s3, 512 }
  0xf2   :  { %p175_p5 = scmp.ne.s32.totalorder %s266_s3, %s174_s5  ;;  %p178_p6 = scmp.lt.u32.totalorder %s174_s5, %s266_s3 }
  0xf4   :  { %p180_p7 = pnand %p178_p6, %p175_p5 }
  0xf6   :  { %183 = shalt.err (!%p180_p7)
}
  0xf7   :  { %s188_s10 = smov 128   ;;  %s189_s11 = smov 8  }
  0xf8   :  { %138 = dma.vmem_to_hbm [thread:$0]  %s133_s29, 512, %s266_s3, [#allocation4], %s188_s10, %s188_s10, %s189_s11  }
  0xf9   :  { %184 = dma.done.wait [#allocation4], 512  }
  0xfa   :  { %185 = vsyncadd [#allocation4], 4294966784 }
  0xfb   :  { %142 = vsyncpa [#allocation4], 1 }

</bundles_post_ra>
